<compile_context>
chip_gen: v7x
topology: tpu7x:2x2x1
jax: 0.10.0
libtpu: 0.0.40
codegen_flags: <defaults>
</compile_context>

<pallas_src>
import jax
import jax.numpy as jnp
from jax import lax
from jax.experimental import pallas as pl
from jax.experimental.pallas import tpu as pltpu

# ---- small analogue of the YAML config dims ----
B = 2            # batch
S = 8            # sequence length          (real model: 128)
D_BERT = 32      # BERT hidden size         (real model: 768/1024)
D_FFN = 64       # BERT FFN intermediate
H_LSTM = 32      # LSTM hidden size         (real model: 1024)
LIN_FEATS = [H_LSTM, 16, 4]   # [in_features, hidden_features..., out_features]
VOCAB = 100
EPS = 1e-5

# Safe everywhere (v5e default is 16 MiB, v6e/v7x default is 32 MiB).
# TODO(synk): raise this at production dims (S=128, D=1024, H=1024).
VMEM_LIMIT_BYTES = 32 * 1024 * 1024


# ----------------------------------------------------------------------------
# Kernel 1: synthetic frozen-BERT transformer layer (per-batch grid, bf16 MXU)
# ----------------------------------------------------------------------------
def _ln_lastdim(x, g, b):
    mu = jnp.mean(x, axis=-1, keepdims=True)
    var = jnp.mean((x - mu) ** 2, axis=-1, keepdims=True)
    return (x - mu) * lax.rsqrt(var + EPS) * g + b


def _gelu(x):
    c = 0.7978845608028654  # sqrt(2/pi)
    return 0.5 * x * (1.0 + jnp.tanh(c * (x + 0.044715 * x * x * x)))


def bert_layer_kernel(x_ref, wq_ref, bq_ref, wk_ref, bk_ref, wv_ref, bv_ref,
                      wo_ref, bo_ref, g1_ref, be1_ref,
                      wf1_ref, bf1_ref, wf2_ref, bf2_ref, g2_ref, be2_ref,
                      o_ref):
    x = x_ref[0]                                  # (S, D) f32
    xb = x.astype(jnp.bfloat16)                   # bf16 MXU operands, f32 accum
    q = jnp.dot(xb, wq_ref[...], preferred_element_type=jnp.float32) + bq_ref[...]
    k = jnp.dot(xb, wk_ref[...], preferred_element_type=jnp.float32) + bk_ref[...]
    v = jnp.dot(xb, wv_ref[...], preferred_element_type=jnp.float32) + bv_ref[...]
    # q @ k^T via dot_general (contract last dims) -> no explicit transpose.
    scores = lax.dot_general(q.astype(jnp.bfloat16), k.astype(jnp.bfloat16),
                             (((1,), (1,)), ((), ())),
                             preferred_element_type=jnp.float32)
    scores = scores * (1.0 / (D_BERT ** 0.5))
    # TODO(synk): attention_mask defaults to None in forward(); masking not applied.
    scores = scores - jnp.max(scores, axis=-1, keepdims=True)
    p = jnp.exp(scores)
    p = p * pl.reciprocal(jnp.sum(p, axis=-1, keepdims=True), approx=True)
    ctx = jnp.dot(p.astype(jnp.bfloat16), v.astype(jnp.bfloat16),
                  preferred_element_type=jnp.float32)
    attn = jnp.dot(ctx.astype(jnp.bfloat16), wo_ref[...],
                   preferred_element_type=jnp.float32) + bo_ref[...]
    h1 = _ln_lastdim(x + attn, g1_ref[...], be1_ref[...])
    ff = _gelu(jnp.dot(h1.astype(jnp.bfloat16), wf1_ref[...],
                       preferred_element_type=jnp.float32) + bf1_ref[...])
    ff = jnp.dot(ff.astype(jnp.bfloat16), wf2_ref[...],
                 preferred_element_type=jnp.float32) + bf2_ref[...]
    o_ref[0] = _ln_lastdim(h1 + ff, g2_ref[...], be2_ref[...])


def bert_layer(emb, p):
    names = ["wq", "bq", "wk", "bk", "wv", "bv", "wo", "bo", "ln1_g", "ln1_b",
             "wf1", "bf1", "wf2", "bf2", "ln2_g", "ln2_b"]
    ws = [p[n] for n in names]
    in_specs = [pl.BlockSpec((1, S, D_BERT), lambda b: (b, 0, 0))]
    in_specs += [pl.BlockSpec(w.shape, lambda b: (0, 0)) for w in ws]
    return pl.pallas_call(
        bert_layer_kernel,
        out_shape=jax.ShapeDtypeStruct((B, S, D_BERT), jnp.float32),
        grid=(B,),
        in_specs=in_specs,
        out_specs=pl.BlockSpec((1, S, D_BERT), lambda b: (b, 0, 0)),
        compiler_params=pltpu.CompilerParams(
            dimension_semantics=("parallel",),
            vmem_limit_bytes=VMEM_LIMIT_BYTES),
    )(emb, *ws)


# ----------------------------------------------------------------------------
# Kernel 2 (fused): LSTM -> LayerNorm([S,H]) -> Linear/ReLU x2 -> mean(seq)
# One grid step per batch sample; no transposes, no intermediate HBM traffic.
# PyTorch gate order [i, f, g, o]; weights pre-transposed (in, 4H);
# bias = b_ih + b_hh.
# ----------------------------------------------------------------------------
def lstm_ln_head_kernel(x_ref, wih_ref, whh_ref, b_ref, lnw_ref, lnb_ref,
                        w1_ref, b1_ref, w2_ref, b2_ref, o_ref):
    x = x_ref[0].astype(jnp.bfloat16)             # (S, D)
    # Hoisted input projection: one MXU matmul covers all S timesteps.
    gx = jnp.dot(x, wih_ref[...],
                 preferred_element_type=jnp.float32) + b_ref[...]   # (S, 4H) f32
    whh = whh_ref[...]                            # (H, 4H) bf16

    h = jnp.zeros((1, H_LSTM), jnp.float32)
    c = jnp.zeros((1, H_LSTM), jnp.float32)
    hs = []
    # TODO(synk): at production S=128 switch to lax.fori_loop + VMEM scratch;
    #             statically unrolled here since S is small (LLO-friendly).
    for t in range(S):
        gates = gx[t:t + 1, :] + jnp.dot(h.astype(jnp.bfloat16), whh,
                                         preferred_element_type=jnp.float32)
        i_g = jax.nn.sigmoid(gates[:, 0 * H_LSTM:1 * H_LSTM])
        f_g = jax.nn.sigmoid(gates[:, 1 * H_LSTM:2 * H_LSTM])
        g_g = jnp.tanh(gates[:, 2 * H_LSTM:3 * H_LSTM])
        o_g = jax.nn.sigmoid(gates[:, 3 * H_LSTM:4 * H_LSTM])
        c = f_g * c + i_g * g_g
        h = o_g * jnp.tanh(c)
        hs.append(h)
    seq = jnp.concatenate(hs, axis=0)             # (S, H) f32

    # nn.LayerNorm([S, H]): per-sample statistics over seq and hidden jointly.
    mu = jnp.mean(seq, axis=(0, 1), keepdims=True)
    var = jnp.mean((seq - mu) ** 2, axis=(0, 1), keepdims=True)
    normed = (seq - mu) * lax.rsqrt(var + EPS) * lnw_ref[...] + lnb_ref[...]

    # Linear -> ReLU -> (dropout = identity, inference) -> Linear -> ReLU
    h1 = jnp.maximum(jnp.dot(normed.astype(jnp.bfloat16), w1_ref[...],
                             preferred_element_type=jnp.float32) + b1_ref[...], 0.0)
    h2 = jnp.maximum(jnp.dot(h1.astype(jnp.bfloat16), w2_ref[...],
                             preferred_element_type=jnp.float32) + b2_ref[...], 0.0)
    # torch.mean(x, dim=1): mean over the sequence dimension.
    o_ref[0] = jnp.mean(h2, axis=0, keepdims=True)          # (1, out)


def lstm_ln_head(x, p):
    ws = [p["lstm_wih"], p["lstm_whh"], p["lstm_b"], p["ln_w"], p["ln_b"],
          p["lin_w1"], p["lin_b1"], p["lin_w2"], p["lin_b2"]]
    in_specs = [pl.BlockSpec((1, S, D_BERT), lambda b: (b, 0, 0))]
    in_specs += [pl.BlockSpec(w.shape, lambda b: (0, 0)) for w in ws]
    out = pl.pallas_call(
        lstm_ln_head_kernel,
        out_shape=jax.ShapeDtypeStruct((B, 1, LIN_FEATS[-1]), jnp.float32),
        grid=(B,),
        in_specs=in_specs,
        out_specs=pl.BlockSpec((1, 1, LIN_FEATS[-1]), lambda b: (b, 0, 0)),
        compiler_params=pltpu.CompilerParams(
            dimension_semantics=("parallel",),
            vmem_limit_bytes=VMEM_LIMIT_BYTES),
    )(x, *ws)
    return out[:, 0, :]                           # (B, out_features)


# ----------------------------------------------------------------------------
# Parameters (deterministic, in-script) and full forward
# ----------------------------------------------------------------------------
def init_params(key):
    ks = jax.random.split(key, 16)

    def w(k, shape, scale=0.02, dtype=jnp.float32):
        return (scale * jax.random.normal(k, shape)).astype(dtype)

    bf16 = jnp.bfloat16
    p = {}
    p["tok_emb"] = w(ks[0], (VOCAB, D_BERT))
    p["pos_emb"] = w(ks[1], (S, D_BERT))
    # matmul weights in bf16 (halves HBM/VMEM traffic); biases/LN params f32
    p["wq"] = w(ks[2], (D_BERT, D_BERT), dtype=bf16); p["bq"] = jnp.zeros((1, D_BERT), jnp.float32)
    p["wk"] = w(ks[3], (D_BERT, D_BERT), dtype=bf16); p["bk"] = jnp.zeros((1, D_BERT), jnp.float32)
    p["wv"] = w(ks[4], (D_BERT, D_BERT), dtype=bf16); p["bv"] = jnp.zeros((1, D_BERT), jnp.float32)
    p["wo"] = w(ks[5], (D_BERT, D_BERT), dtype=bf16); p["bo"] = jnp.zeros((1, D_BERT), jnp.float32)
    p["ln1_g"] = jnp.ones((1, D_BERT), jnp.float32)
    p["ln1_b"] = jnp.zeros((1, D_BERT), jnp.float32)
    p["wf1"] = w(ks[6], (D_BERT, D_FFN), dtype=bf16); p["bf1"] = jnp.zeros((1, D_FFN), jnp.float32)
    p["wf2"] = w(ks[7], (D_FFN, D_BERT), dtype=bf16); p["bf2"] = jnp.zeros((1, D_BERT), jnp.float32)
    p["ln2_g"] = jnp.ones((1, D_BERT), jnp.float32)
    p["ln2_b"] = jnp.zeros((1, D_BERT), jnp.float32)
    # LSTM (single layer, batch_first); pre-transposed, bias = b_ih + b_hh
    p["lstm_wih"] = w(ks[8], (D_BERT, 4 * H_LSTM), dtype=bf16)
    p["lstm_whh"] = w(ks[9], (H_LSTM, 4 * H_LSTM), dtype=bf16)
    p["lstm_b"] = w(ks[10], (1, 4 * H_LSTM))
    # LayerNorm over [S, H_LSTM]  (analog of nn.LayerNorm([128, 1024]))
    p["ln_w"] = jnp.ones((S, H_LSTM), jnp.float32)
    p["ln_b"] = jnp.zeros((S, H_LSTM), jnp.float32)
    # Linear head (pre-transposed (in, out))
    p["lin_w1"] = w(ks[11], (LIN_FEATS[0], LIN_FEATS[1]), dtype=bf16)
    p["lin_b1"] = w(ks[12], (1, LIN_FEATS[1]))
    p["lin_w2"] = w(ks[13], (LIN_FEATS[1], LIN_FEATS[2]), dtype=bf16)
    p["lin_b2"] = w(ks[14], (1, LIN_FEATS[2]))
    return p


@jax.jit
def forward(params, token_ids):
    # glue: embedding lookup (gather) + learned position embeddings
    emb = params["tok_emb"][token_ids] + params["pos_emb"][None, :, :]   # (B, S, D)
    hidden = bert_layer(emb, params)          # frozen-BERT last_hidden_state (B, S, D)
    return lstm_ln_head(hidden, params)       # fused LSTM+LN+MLP+mean -> (B, out)


if __name__ == "__main__":
    key = jax.random.PRNGKey(0)
    k_tok, k_param = jax.random.split(key)
    token_ids = jax.random.randint(k_tok, (B, S), 0, VOCAB, dtype=jnp.int32)
    params = init_params(k_param)

    out = forward(params, token_ids)
    out = jax.block_until_ready(out)

    assert out.shape == (B, LIN_FEATS[-1]), out.shape
    assert out.dtype == jnp.float32
    assert bool(jnp.all(jnp.isfinite(out)))
    print("KERNEL_OK")
</pallas_src>

<mosaic_0001>
module attributes {stable_mosaic.version = 11 : i64} {
  func.func @bert_layer_kernel(%arg0: i32, %arg1: memref<1x8x32xf32, #tpu.memory_space<vmem>>, %arg2: memref<32x32xbf16, #tpu.memory_space<vmem>>, %arg3: memref<1x32xf32, #tpu.memory_space<vmem>>, %arg4: memref<32x32xbf16, #tpu.memory_space<vmem>>, %arg5: memref<1x32xf32, #tpu.memory_space<vmem>>, %arg6: memref<32x32xbf16, #tpu.memory_space<vmem>>, %arg7: memref<1x32xf32, #tpu.memory_space<vmem>>, %arg8: memref<32x32xbf16, #tpu.memory_space<vmem>>, %arg9: memref<1x32xf32, #tpu.memory_space<vmem>>, %arg10: memref<1x32xf32, #tpu.memory_space<vmem>>, %arg11: memref<1x32xf32, #tpu.memory_space<vmem>>, %arg12: memref<32x64xbf16, #tpu.memory_space<vmem>>, %arg13: memref<1x64xf32, #tpu.memory_space<vmem>>, %arg14: memref<64x32xbf16, #tpu.memory_space<vmem>>, %arg15: memref<1x32xf32, #tpu.memory_space<vmem>>, %arg16: memref<1x32xf32, #tpu.memory_space<vmem>>, %arg17: memref<1x32xf32, #tpu.memory_space<vmem>>, %arg18: memref<1x8x32xf32, #tpu.memory_space<vmem>>) attributes {dimension_semantics = [#tpu.dimension_semantics<parallel>], iteration_bounds = array<i64: 2>, scalar_prefetch = 0 : i64, scratch_operands = 0 : i64, tpu.core_type = #tpu.core_type<tc>, window_params = [{transform_indices = @transform_0, window_bounds = array<i64: 1, 8, 32>}, {pipeline_mode = #tpu.pipeline_mode<synchronous>, transform_indices = @transform_1, window_bounds = array<i64: 32, 32>}, {pipeline_mode = #tpu.pipeline_mode<synchronous>, transform_indices = @transform_2, window_bounds = array<i64: 1, 32>}, {pipeline_mode = #tpu.pipeline_mode<synchronous>, transform_indices = @transform_3, window_bounds = array<i64: 32, 32>}, {pipeline_mode = #tpu.pipeline_mode<synchronous>, transform_indices = @transform_4, window_bounds = array<i64: 1, 32>}, {pipeline_mode = #tpu.pipeline_mode<synchronous>, transform_indices = @transform_5, window_bounds = array<i64: 32, 32>}, {pipeline_mode = #tpu.pipeline_mode<synchronous>, transform_indices = @transform_6, window_bounds = array<i64: 1, 32>}, {pipeline_mode = #tpu.pipeline_mode<synchronous>, transform_indices = @transform_7, window_bounds = array<i64: 32, 32>}, {pipeline_mode = #tpu.pipeline_mode<synchronous>, transform_indices = @transform_8, window_bounds = array<i64: 1, 32>}, {pipeline_mode = #tpu.pipeline_mode<synchronous>, transform_indices = @transform_9, window_bounds = array<i64: 1, 32>}, {pipeline_mode = #tpu.pipeline_mode<synchronous>, transform_indices = @transform_10, window_bounds = array<i64: 1, 32>}, {pipeline_mode = #tpu.pipeline_mode<synchronous>, transform_indices = @transform_11, window_bounds = array<i64: 32, 64>}, {pipeline_mode = #tpu.pipeline_mode<synchronous>, transform_indices = @transform_12, window_bounds = array<i64: 1, 64>}, {pipeline_mode = #tpu.pipeline_mode<synchronous>, transform_indices = @transform_13, window_bounds = array<i64: 64, 32>}, {pipeline_mode = #tpu.pipeline_mode<synchronous>, transform_indices = @transform_14, window_bounds = array<i64: 1, 32>}, {pipeline_mode = #tpu.pipeline_mode<synchronous>, transform_indices = @transform_15, window_bounds = array<i64: 1, 32>}, {pipeline_mode = #tpu.pipeline_mode<synchronous>, transform_indices = @transform_16, window_bounds = array<i64: 1, 32>}, {transform_indices = @transform_17, window_bounds = array<i64: 1, 8, 32>}]} {
    %c0 = arith.constant 0 : index
    %c0_0 = arith.constant 0 : index
    %c0_1 = arith.constant 0 : index
    %0 = vector.load %arg1[%c0, %c0_0, %c0_1] : memref<1x8x32xf32, #tpu.memory_space<vmem>>, vector<1x8x32xf32>
    %1 = vector.shape_cast %0 : vector<1x8x32xf32> to vector<8x32xf32>
    %2 = arith.truncf %1 : vector<8x32xf32> to vector<8x32xbf16>
    %c0_2 = arith.constant 0 : index
    %c0_3 = arith.constant 0 : index
    %3 = vector.load %arg2[%c0_2, %c0_3] : memref<32x32xbf16, #tpu.memory_space<vmem>>, vector<32x32xbf16>
    %cst = arith.constant dense<0.000000e+00> : vector<8x32xf32>
    %4 = tpu.matmul %2, %3, %cst {dimension_numbers = #tpu.dot_dimension_numbers<[1], [0], [0], [1], [0, 0, 1, 1], [], []>} : vector<8x32xbf16>, vector<32x32xbf16>, vector<8x32xf32> -> vector<8x32xf32>
    %c0_4 = arith.constant 0 : index
    %c0_5 = arith.constant 0 : index
    %5 = vector.load %arg3[%c0_4, %c0_5] : memref<1x32xf32, #tpu.memory_space<vmem>>, vector<1x32xf32>
    %6 = vector.broadcast %5 : vector<1x32xf32> to vector<8x32xf32>
    %7 = arith.addf %4, %6 : vector<8x32xf32>
    %c0_6 = arith.constant 0 : index
    %c0_7 = arith.constant 0 : index
    %8 = vector.load %arg4[%c0_6, %c0_7] : memref<32x32xbf16, #tpu.memory_space<vmem>>, vector<32x32xbf16>
    %cst_8 = arith.constant dense<0.000000e+00> : vector<8x32xf32>
    %9 = tpu.matmul %2, %8, %cst_8 {dimension_numbers = #tpu.dot_dimension_numbers<[1], [0], [0], [1], [0, 0, 1, 1], [], []>} : vector<8x32xbf16>, vector<32x32xbf16>, vector<8x32xf32> -> vector<8x32xf32>
    %c0_9 = arith.constant 0 : index
    %c0_10 = arith.constant 0 : index
    %10 = vector.load %arg5[%c0_9, %c0_10] : memref<1x32xf32, #tpu.memory_space<vmem>>, vector<1x32xf32>
    %11 = vector.broadcast %10 : vector<1x32xf32> to vector<8x32xf32>
    %12 = arith.addf %9, %11 : vector<8x32xf32>
    %c0_11 = arith.constant 0 : index
    %c0_12 = arith.constant 0 : index
    %13 = vector.load %arg6[%c0_11, %c0_12] : memref<32x32xbf16, #tpu.memory_space<vmem>>, vector<32x32xbf16>
    %cst_13 = arith.constant dense<0.000000e+00> : vector<8x32xf32>
    %14 = tpu.matmul %2, %13, %cst_13 {dimension_numbers = #tpu.dot_dimension_numbers<[1], [0], [0], [1], [0, 0, 1, 1], [], []>} : vector<8x32xbf16>, vector<32x32xbf16>, vector<8x32xf32> -> vector<8x32xf32>
    %c0_14 = arith.constant 0 : index
    %c0_15 = arith.constant 0 : index
    %15 = vector.load %arg7[%c0_14, %c0_15] : memref<1x32xf32, #tpu.memory_space<vmem>>, vector<1x32xf32>
    %16 = vector.broadcast %15 : vector<1x32xf32> to vector<8x32xf32>
    %17 = arith.addf %14, %16 : vector<8x32xf32>
    %18 = arith.truncf %7 : vector<8x32xf32> to vector<8x32xbf16>
    %19 = arith.truncf %12 : vector<8x32xf32> to vector<8x32xbf16>
    %cst_16 = arith.constant dense<0.000000e+00> : vector<8x8xf32>
    %20 = tpu.matmul %18, %19, %cst_16 {dimension_numbers = #tpu.dot_dimension_numbers<[1], [1], [0], [0], [0, 0, 1, 0], [], []>} : vector<8x32xbf16>, vector<8x32xbf16>, vector<8x8xf32> -> vector<8x8xf32>
    %cst_17 = arith.constant 0.176776692 : f32
    %21 = vector.broadcast %cst_17 : f32 to vector<8x8xf32>
    %22 = arith.mulf %20, %21 : vector<8x8xf32>
    %cst_18 = arith.constant dense<0xFF800000> : vector<8xf32>
    %23 = vector.multi_reduction <maximumf>, %22, %cst_18 [1] : vector<8x8xf32> to vector<8xf32>
    %24 = vector.shape_cast %23 : vector<8xf32> to vector<8x1xf32>
    %25 = vector.broadcast %24 : vector<8x1xf32> to vector<8x8xf32>
    %26 = arith.subf %22, %25 : vector<8x8xf32>
    %27 = math.exp %26 : vector<8x8xf32>
    %cst_19 = arith.constant dense<0.000000e+00> : vector<8xf32>
    %28 = vector.multi_reduction <add>, %27, %cst_19 [1] : vector<8x8xf32> to vector<8xf32>
    %29 = vector.shape_cast %28 : vector<8xf32> to vector<8x1xf32>
    %30 = tpu.reciprocal %29 {approx = true} : vector<8x1xf32> -> vector<8x1xf32>
    %31 = vector.broadcast %30 : vector<8x1xf32> to vector<8x8xf32>
    %32 = arith.mulf %27, %31 : vector<8x8xf32>
    %33 = arith.truncf %32 : vector<8x8xf32> to vector<8x8xbf16>
    %34 = arith.truncf %17 : vector<8x32xf32> to vector<8x32xbf16>
    %cst_20 = arith.constant dense<0.000000e+00> : vector<8x32xf32>
    %35 = tpu.matmul %33, %34, %cst_20 {dimension_numbers = #tpu.dot_dimension_numbers<[1], [0], [0], [1], [0, 0, 1, 1], [], []>} : vector<8x8xbf16>, vector<8x32xbf16>, vector<8x32xf32> -> vector<8x32xf32>
    %36 = arith.truncf %35 : vector<8x32xf32> to vector<8x32xbf16>
    %c0_21 = arith.constant 0 : index
    %c0_22 = arith.constant 0 : index
    %37 = vector.load %arg8[%c0_21, %c0_22] : memref<32x32xbf16, #tpu.memory_space<vmem>>, vector<32x32xbf16>
    %cst_23 = arith.constant dense<0.000000e+00> : vector<8x32xf32>
    %38 = tpu.matmul %36, %37, %cst_23 {dimension_numbers = #tpu.dot_dimension_numbers<[1], [0], [0], [1], [0, 0, 1, 1], [], []>} : vector<8x32xbf16>, vector<32x32xbf16>, vector<8x32xf32> -> vector<8x32xf32>
    %c0_24 = arith.constant 0 : index
    %c0_25 = arith.constant 0 : index
    %39 = vector.load %arg9[%c0_24, %c0_25] : memref<1x32xf32, #tpu.memory_space<vmem>>, vector<1x32xf32>
    %40 = vector.broadcast %39 : vector<1x32xf32> to vector<8x32xf32>
    %41 = arith.addf %38, %40 : vector<8x32xf32>
    %42 = arith.addf %1, %41 : vector<8x32xf32>
    %c0_26 = arith.constant 0 : index
    %c0_27 = arith.constant 0 : index
    %43 = vector.load %arg10[%c0_26, %c0_27] : memref<1x32xf32, #tpu.memory_space<vmem>>, vector<1x32xf32>
    %c0_28 = arith.constant 0 : index
    %c0_29 = arith.constant 0 : index
    %44 = vector.load %arg11[%c0_28, %c0_29] : memref<1x32xf32, #tpu.memory_space<vmem>>, vector<1x32xf32>
    %cst_30 = arith.constant dense<0.000000e+00> : vector<8xf32>
    %45 = vector.multi_reduction <add>, %42, %cst_30 [1] : vector<8x32xf32> to vector<8xf32>
    %46 = vector.shape_cast %45 : vector<8xf32> to vector<8x1xf32>
    %cst_31 = arith.constant 3.200000e+01 : f32
    %47 = vector.broadcast %cst_31 : f32 to vector<8x1xf32>
    %48 = arith.divf %46, %47 : vector<8x1xf32>
    %49 = vector.broadcast %48 : vector<8x1xf32> to vector<8x32xf32>
    %50 = arith.subf %42, %49 : vector<8x32xf32>
    %51 = arith.mulf %50, %50 : vector<8x32xf32>
    %cst_32 = arith.constant dense<0.000000e+00> : vector<8xf32>
    %52 = vector.multi_reduction <add>, %51, %cst_32 [1] : vector<8x32xf32> to vector<8xf32>
    %53 = vector.shape_cast %52 : vector<8xf32> to vector<8x1xf32>
    %cst_33 = arith.constant 3.200000e+01 : f32
    %54 = vector.broadcast %cst_33 : f32 to vector<8x1xf32>
    %55 = arith.divf %53, %54 : vector<8x1xf32>
    %56 = vector.broadcast %48 : vector<8x1xf32> to vector<8x32xf32>
    %57 = arith.subf %42, %56 : vector<8x32xf32>
    %cst_34 = arith.constant 9.99999974E-6 : f32
    %58 = vector.broadcast %cst_34 : f32 to vector<8x1xf32>
    %59 = arith.addf %55, %58 : vector<8x1xf32>
    %60 = math.rsqrt %59 : vector<8x1xf32>
    %61 = vector.broadcast %60 : vector<8x1xf32> to vector<8x32xf32>
    %62 = arith.mulf %57, %61 : vector<8x32xf32>
    %63 = vector.broadcast %43 : vector<1x32xf32> to vector<8x32xf32>
    %64 = arith.mulf %62, %63 : vector<8x32xf32>
    %65 = vector.broadcast %44 : vector<1x32xf32> to vector<8x32xf32>
    %66 = arith.addf %64, %65 : vector<8x32xf32>
    %67 = arith.truncf %66 : vector<8x32xf32> to vector<8x32xbf16>
    %c0_35 = arith.constant 0 : index
    %c0_36 = arith.constant 0 : index
    %68 = vector.load %arg12[%c0_35, %c0_36] : memref<32x64xbf16, #tpu.memory_space<vmem>>, vector<32x64xbf16>
    %cst_37 = arith.constant dense<0.000000e+00> : vector<8x64xf32>
    %69 = tpu.matmul %67, %68, %cst_37 {dimension_numbers = #tpu.dot_dimension_numbers<[1], [0], [0], [1], [0, 0, 1, 1], [], []>} : vector<8x32xbf16>, vector<32x64xbf16>, vector<8x64xf32> -> vector<8x64xf32>
    %c0_38 = arith.constant 0 : index
    %c0_39 = arith.constant 0 : index
    %70 = vector.load %arg13[%c0_38, %c0_39] : memref<1x64xf32, #tpu.memory_space<vmem>>, vector<1x64xf32>
    %71 = vector.broadcast %70 : vector<1x64xf32> to vector<8x64xf32>
    %72 = arith.addf %69, %71 : vector<8x64xf32>
    %cst_40 = arith.constant 5.000000e-01 : f32
    %73 = vector.broadcast %cst_40 : f32 to vector<8x64xf32>
    %74 = arith.mulf %73, %72 : vector<8x64xf32>
    %cst_41 = arith.constant 4.471500e-02 : f32
    %75 = vector.broadcast %cst_41 : f32 to vector<8x64xf32>
    %76 = arith.mulf %75, %72 : vector<8x64xf32>
    %77 = arith.mulf %76, %72 : vector<8x64xf32>
    %78 = arith.mulf %77, %72 : vector<8x64xf32>
    %79 = arith.addf %72, %78 : vector<8x64xf32>
    %cst_42 = arith.constant 0.797884583 : f32
    %80 = vector.broadcast %cst_42 : f32 to vector<8x64xf32>
    %81 = arith.mulf %80, %79 : vector<8x64xf32>
    %82 = math.tanh %81 : vector<8x64xf32>
    %cst_43 = arith.constant 1.000000e+00 : f32
    %83 = vector.broadcast %cst_43 : f32 to vector<8x64xf32>
    %84 = arith.addf %83, %82 : vector<8x64xf32>
    %85 = arith.mulf %74, %84 : vector<8x64xf32>
    %86 = arith.truncf %85 : vector<8x64xf32> to vector<8x64xbf16>
    %c0_44 = arith.constant 0 : index
    %c0_45 = arith.constant 0 : index
    %87 = vector.load %arg14[%c0_44, %c0_45] : memref<64x32xbf16, #tpu.memory_space<vmem>>, vector<64x32xbf16>
    %cst_46 = arith.constant dense<0.000000e+00> : vector<8x32xf32>
    %88 = tpu.matmul %86, %87, %cst_46 {dimension_numbers = #tpu.dot_dimension_numbers<[1], [0], [0], [1], [0, 0, 1, 1], [], []>} : vector<8x64xbf16>, vector<64x32xbf16>, vector<8x32xf32> -> vector<8x32xf32>
    %c0_47 = arith.constant 0 : index
    %c0_48 = arith.constant 0 : index
    %89 = vector.load %arg15[%c0_47, %c0_48] : memref<1x32xf32, #tpu.memory_space<vmem>>, vector<1x32xf32>
    %90 = vector.broadcast %89 : vector<1x32xf32> to vector<8x32xf32>
    %91 = arith.addf %88, %90 : vector<8x32xf32>
    %92 = arith.addf %66, %91 : vector<8x32xf32>
    %c0_49 = arith.constant 0 : index
    %c0_50 = arith.constant 0 : index
    %93 = vector.load %arg16[%c0_49, %c0_50] : memref<1x32xf32, #tpu.memory_space<vmem>>, vector<1x32xf32>
    %c0_51 = arith.constant 0 : index
    %c0_52 = arith.constant 0 : index
    %94 = vector.load %arg17[%c0_51, %c0_52] : memref<1x32xf32, #tpu.memory_space<vmem>>, vector<1x32xf32>
    %cst_53 = arith.constant dense<0.000000e+00> : vector<8xf32>
    %95 = vector.multi_reduction <add>, %92, %cst_53 [1] : vector<8x32xf32> to vector<8xf32>
    %96 = vector.shape_cast %95 : vector<8xf32> to vector<8x1xf32>
    %cst_54 = arith.constant 3.200000e+01 : f32
    %97 = vector.broadcast %cst_54 : f32 to vector<8x1xf32>
    %98 = arith.divf %96, %97 : vector<8x1xf32>
    %99 = vector.broadcast %98 : vector<8x1xf32> to vector<8x32xf32>
    %100 = arith.subf %92, %99 : vector<8x32xf32>
    %101 = arith.mulf %100, %100 : vector<8x32xf32>
    %cst_55 = arith.constant dense<0.000000e+00> : vector<8xf32>
    %102 = vector.multi_reduction <add>, %101, %cst_55 [1] : vector<8x32xf32> to vector<8xf32>
    %103 = vector.shape_cast %102 : vector<8xf32> to vector<8x1xf32>
    %cst_56 = arith.constant 3.200000e+01 : f32
    %104 = vector.broadcast %cst_56 : f32 to vector<8x1xf32>
    %105 = arith.divf %103, %104 : vector<8x1xf32>
    %106 = vector.broadcast %98 : vector<8x1xf32> to vector<8x32xf32>
    %107 = arith.subf %92, %106 : vector<8x32xf32>
    %cst_57 = arith.constant 9.99999974E-6 : f32
    %108 = vector.broadcast %cst_57 : f32 to vector<8x1xf32>
    %109 = arith.addf %105, %108 : vector<8x1xf32>
    %110 = math.rsqrt %109 : vector<8x1xf32>
    %111 = vector.broadcast %110 : vector<8x1xf32> to vector<8x32xf32>
    %112 = arith.mulf %107, %111 : vector<8x32xf32>
    %113 = vector.broadcast %93 : vector<1x32xf32> to vector<8x32xf32>
    %114 = arith.mulf %112, %113 : vector<8x32xf32>
    %115 = vector.broadcast %94 : vector<1x32xf32> to vector<8x32xf32>
    %116 = arith.addf %114, %115 : vector<8x32xf32>
    %c0_58 = arith.constant 0 : index
    %c0_59 = arith.constant 0 : index
    %c0_60 = arith.constant 0 : index
    %117 = vector.load %arg18[%c0_58, %c0_59, %c0_60] : memref<1x8x32xf32, #tpu.memory_space<vmem>>, vector<1x8x32xf32>
    %118 = vector.shape_cast %117 : vector<1x8x32xf32> to vector<8x32xf32>
    %119 = vector.shape_cast %116 : vector<8x32xf32> to vector<1x8x32xf32>
    tpu.vector_store %arg18[%c0_58, %c0_59, %c0_60], %119 {strides = array<i32>} : memref<1x8x32xf32, #tpu.memory_space<vmem>>, vector<1x8x32xf32>,
    return
  }
  func.func @transform_0(%arg0: i32) -> (i32, i32, i32) {
    %c0_i32 = arith.constant 0 : i32
    %c0_i32_0 = arith.constant 0 : i32
    %c0_i32_1 = arith.constant 0 : i32
    return %arg0, %c0_i32, %c0_i32_0 : i32, i32, i32
  }
  func.func @transform_1(%arg0: i32) -> (i32, i32) {
    %c0_i32 = arith.constant 0 : i32
    %c0_i32_0 = arith.constant 0 : i32
    %c0_i32_1 = arith.constant 0 : i32
    return %c0_i32, %c0_i32_0 : i32, i32
  }
  func.func @transform_2(%arg0: i32) -> (i32, i32) {
    %c0_i32 = arith.constant 0 : i32
    %c0_i32_0 = arith.constant 0 : i32
    %c0_i32_1 = arith.constant 0 : i32
    return %c0_i32, %c0_i32_0 : i32, i32
  }
  func.func @transform_3(%arg0: i32) -> (i32, i32) {
    %c0_i32 = arith.constant 0 : i32
    %c0_i32_0 = arith.constant 0 : i32
    %c0_i32_1 = arith.constant 0 : i32
    return %c0_i32, %c0_i32_0 : i32, i32
  }
  func.func @transform_4(%arg0: i32) -> (i32, i32) {
    %c0_i32 = arith.constant 0 : i32
    %c0_i32_0 = arith.constant 0 : i32
    %c0_i32_1 = arith.constant 0 : i32
    return %c0_i32, %c0_i32_0 : i32, i32
  }
  func.func @transform_5(%arg0: i32) -> (i32, i32) {
    %c0_i32 = arith.constant 0 : i32
    %c0_i32_0 = arith.constant 0 : i32
    %c0_i32_1 = arith.constant 0 : i32
    return %c0_i32, %c0_i32_0 : i32, i32
  }
  func.func @transform_6(%arg0: i32) -> (i32, i32) {
    %c0_i32 = arith.constant 0 : i32
    %c0_i32_0 = arith.constant 0 : i32
    %c0_i32_1 = arith.constant 0 : i32
    return %c0_i32, %c0_i32_0 : i32, i32
  }
  func.func @transform_7(%arg0: i32) -> (i32, i32) {
    %c0_i32 = arith.constant 0 : i32
    %c0_i32_0 = arith.constant 0 : i32
    %c0_i32_1 = arith.constant 0 : i32
    return %c0_i32, %c0_i32_0 : i32, i32
  }
  func.func @transform_8(%arg0: i32) -> (i32, i32) {
    %c0_i32 = arith.constant 0 : i32
    %c0_i32_0 = arith.constant 0 : i32
    %c0_i32_1 = arith.constant 0 : i32
    return %c0_i32, %c0_i32_0 : i32, i32
  }
  func.func @transform_9(%arg0: i32) -> (i32, i32) {
    %c0_i32 = arith.constant 0 : i32
    %c0_i32_0 = arith.constant 0 : i32
    %c0_i32_1 = arith.constant 0 : i32
    return %c0_i32, %c0_i32_0 : i32, i32
  }
  func.func @transform_10(%arg0: i32) -> (i32, i32) {
    %c0_i32 = arith.constant 0 : i32
    %c0_i32_0 = arith.constant 0 : i32
    %c0_i32_1 = arith.constant 0 : i32
    return %c0_i32, %c0_i32_0 : i32, i32
  }
  func.func @transform_11(%arg0: i32) -> (i32, i32) {
    %c0_i32 = arith.constant 0 : i32
    %c0_i32_0 = arith.constant 0 : i32
    %c0_i32_1 = arith.constant 0 : i32
    return %c0_i32, %c0_i32_0 : i32, i32
  }
  func.func @transform_12(%arg0: i32) -> (i32, i32) {
    %c0_i32 = arith.constant 0 : i32
    %c0_i32_0 = arith.constant 0 : i32
    %c0_i32_1 = arith.constant 0 : i32
    return %c0_i32, %c0_i32_0 : i32, i32
  }
  func.func @transform_13(%arg0: i32) -> (i32, i32) {
    %c0_i32 = arith.constant 0 : i32
    %c0_i32_0 = arith.constant 0 : i32
    %c0_i32_1 = arith.constant 0 : i32
    return %c0_i32, %c0_i32_0 : i32, i32
  }
  func.func @transform_14(%arg0: i32) -> (i32, i32) {
    %c0_i32 = arith.constant 0 : i32
    %c0_i32_0 = arith.constant 0 : i32
    %c0_i32_1 = arith.constant 0 : i32
    return %c0_i32, %c0_i32_0 : i32, i32
  }
  func.func @transform_15(%arg0: i32) -> (i32, i32) {
    %c0_i32 = arith.constant 0 : i32
    %c0_i32_0 = arith.constant 0 : i32
    %c0_i32_1 = arith.constant 0 : i32
    return %c0_i32, %c0_i32_0 : i32, i32
  }
  func.func @transform_16(%arg0: i32) -> (i32, i32) {
    %c0_i32 = arith.constant 0 : i32
    %c0_i32_0 = arith.constant 0 : i32
    %c0_i32_1 = arith.constant 0 : i32
    return %c0_i32, %c0_i32_0 : i32, i32
  }
  func.func @transform_17(%arg0: i32) -> (i32, i32, i32) {
    %c0_i32 = arith.constant 0 : i32
    %c0_i32_0 = arith.constant 0 : i32
    %c0_i32_1 = arith.constant 0 : i32
    return %arg0, %c0_i32, %c0_i32_0 : i32, i32, i32
  }
}

module attributes {stable_mosaic.version = 11 : i64} {
  func.func @lstm_ln_head_kernel(%arg0: i32, %arg1: memref<1x8x32xf32, #tpu.memory_space<vmem>>, %arg2: memref<32x128xbf16, #tpu.memory_space<vmem>>, %arg3: memref<32x128xbf16, #tpu.memory_space<vmem>>, %arg4: memref<1x128xf32, #tpu.memory_space<vmem>>, %arg5: memref<8x32xf32, #tpu.memory_space<vmem>>, %arg6: memref<8x32xf32, #tpu.memory_space<vmem>>, %arg7: memref<32x16xbf16, #tpu.memory_space<vmem>>, %arg8: memref<1x16xf32, #tpu.memory_space<vmem>>, %arg9: memref<16x4xbf16, #tpu.memory_space<vmem>>, %arg10: memref<1x4xf32, #tpu.memory_space<vmem>>, %arg11: memref<1x1x4xf32, #tpu.memory_space<vmem>>) attributes {dimension_semantics = [#tpu.dimension_semantics<parallel>], iteration_bounds = array<i64: 2>, scalar_prefetch = 0 : i64, scratch_operands = 0 : i64, tpu.core_type = #tpu.core_type<tc>, window_params = [{transform_indices = @transform_0, window_bounds = array<i64: 1, 8, 32>}, {pipeline_mode = #tpu.pipeline_mode<synchronous>, transform_indices = @transform_1, window_bounds = array<i64: 32, 128>}, {pipeline_mode = #tpu.pipeline_mode<synchronous>, transform_indices = @transform_2, window_bounds = array<i64: 32, 128>}, {pipeline_mode = #tpu.pipeline_mode<synchronous>, transform_indices = @transform_3, window_bounds = array<i64: 1, 128>}, {pipeline_mode = #tpu.pipeline_mode<synchronous>, transform_indices = @transform_4, window_bounds = array<i64: 8, 32>}, {pipeline_mode = #tpu.pipeline_mode<synchronous>, transform_indices = @transform_5, window_bounds = array<i64: 8, 32>}, {pipeline_mode = #tpu.pipeline_mode<synchronous>, transform_indices = @transform_6, window_bounds = array<i64: 32, 16>}, {pipeline_mode = #tpu.pipeline_mode<synchronous>, transform_indices = @transform_7, window_bounds = array<i64: 1, 16>}, {pipeline_mode = #tpu.pipeline_mode<synchronous>, transform_indices = @transform_8, window_bounds = array<i64: 16, 4>}, {pipeline_mode = #tpu.pipeline_mode<synchronous>, transform_indices = @transform_9, window_bounds = array<i64: 1, 4>}, {transform_indices = @transform_10, window_bounds = array<i64: 1, 1, 4>}]} {
    %c0 = arith.constant 0 : index
    %c0_0 = arith.constant 0 : index
    %c0_1 = arith.constant 0 : index
    %0 = vector.load %arg1[%c0, %c0_0, %c0_1] : memref<1x8x32xf32, #tpu.memory_space<vmem>>, vector<1x8x32xf32>
    %1 = vector.shape_cast %0 : vector<1x8x32xf32> to vector<8x32xf32>
    %2 = arith.truncf %1 : vector<8x32xf32> to vector<8x32xbf16>
    %c0_2 = arith.constant 0 : index
    %c0_3 = arith.constant 0 : index
    %3 = vector.load %arg2[%c0_2, %c0_3] : memref<32x128xbf16, #tpu.memory_space<vmem>>, vector<32x128xbf16>
    %cst = arith.constant dense<0.000000e+00> : vector<8x128xf32>
    %4 = tpu.matmul %2, %3, %cst {dimension_numbers = #tpu.dot_dimension_numbers<[1], [0], [0], [1], [0, 0, 1, 1], [], []>} : vector<8x32xbf16>, vector<32x128xbf16>, vector<8x128xf32> -> vector<8x128xf32>
    %c0_4 = arith.constant 0 : index
    %c0_5 = arith.constant 0 : index
    %5 = vector.load %arg4[%c0_4, %c0_5] : memref<1x128xf32, #tpu.memory_space<vmem>>, vector<1x128xf32>
    %6 = vector.broadcast %5 : vector<1x128xf32> to vector<8x128xf32>
    %7 = arith.addf %4, %6 : vector<8x128xf32>
    %c0_6 = arith.constant 0 : index
    %c0_7 = arith.constant 0 : index
    %8 = vector.load %arg3[%c0_6, %c0_7] : memref<32x128xbf16, #tpu.memory_space<vmem>>, vector<32x128xbf16>
    %cst_8 = arith.constant 0.000000e+00 : f32
    %9 = vector.broadcast %cst_8 : f32 to vector<1x32xf32>
    %cst_9 = arith.constant 0.000000e+00 : f32
    %10 = vector.broadcast %cst_9 : f32 to vector<1x32xf32>
    %11 = vector.extract_strided_slice %7 {offsets = [0, 0], sizes = [1, 128], strides = [1, 1]} : vector<8x128xf32> to vector<1x128xf32>
    %12 = arith.truncf %9 : vector<1x32xf32> to vector<1x32xbf16>
    %cst_10 = arith.constant dense<0.000000e+00> : vector<1x128xf32>
    %13 = tpu.matmul %12, %8, %cst_10 {dimension_numbers = #tpu.dot_dimension_numbers<[1], [0], [0], [1], [0, 0, 1, 1], [], []>} : vector<1x32xbf16>, vector<32x128xbf16>, vector<1x128xf32> -> vector<1x128xf32>
    %14 = arith.addf %11, %13 : vector<1x128xf32>
    %15 = vector.extract_strided_slice %14 {offsets = [0, 0], sizes = [1, 32], strides = [1, 1]} : vector<1x128xf32> to vector<1x32xf32>
    %16 = arith.negf %15 : vector<1x32xf32>
    %17 = math.exp %16 : vector<1x32xf32>
    %cst_11 = arith.constant 1.000000e+00 : f32
    %18 = vector.broadcast %cst_11 : f32 to vector<1x32xf32>
    %19 = arith.addf %18, %17 : vector<1x32xf32>
    %20 = arith.divf %18, %19 : vector<1x32xf32>
    %21 = vector.extract_strided_slice %14 {offsets = [0, 32], sizes = [1, 32], strides = [1, 1]} : vector<1x128xf32> to vector<1x32xf32>
    %22 = arith.negf %21 : vector<1x32xf32>
    %23 = math.exp %22 : vector<1x32xf32>
    %cst_12 = arith.constant 1.000000e+00 : f32
    %24 = vector.broadcast %cst_12 : f32 to vector<1x32xf32>
    %25 = arith.addf %24, %23 : vector<1x32xf32>
    %26 = arith.divf %24, %25 : vector<1x32xf32>
    %27 = vector.extract_strided_slice %14 {offsets = [0, 64], sizes = [1, 32], strides = [1, 1]} : vector<1x128xf32> to vector<1x32xf32>
    %28 = math.tanh %27 : vector<1x32xf32>
    %29 = vector.extract_strided_slice %14 {offsets = [0, 96], sizes = [1, 32], strides = [1, 1]} : vector<1x128xf32> to vector<1x32xf32>
    %30 = arith.negf %29 : vector<1x32xf32>
    %31 = math.exp %30 : vector<1x32xf32>
    %cst_13 = arith.constant 1.000000e+00 : f32
    %32 = vector.broadcast %cst_13 : f32 to vector<1x32xf32>
    %33 = arith.addf %32, %31 : vector<1x32xf32>
    %34 = arith.divf %32, %33 : vector<1x32xf32>
    %35 = arith.mulf %26, %10 : vector<1x32xf32>
    %36 = arith.mulf %20, %28 : vector<1x32xf32>
    %37 = arith.addf %35, %36 : vector<1x32xf32>
    %38 = math.tanh %37 : vector<1x32xf32>
    %39 = arith.mulf %34, %38 : vector<1x32xf32>
    %40 = vector.extract_strided_slice %7 {offsets = [1, 0], sizes = [1, 128], strides = [1, 1]} : vector<8x128xf32> to vector<1x128xf32>
    %41 = arith.truncf %39 : vector<1x32xf32> to vector<1x32xbf16>
    %cst_14 = arith.constant dense<0.000000e+00> : vector<1x128xf32>
    %42 = tpu.matmul %41, %8, %cst_14 {dimension_numbers = #tpu.dot_dimension_numbers<[1], [0], [0], [1], [0, 0, 1, 1], [], []>} : vector<1x32xbf16>, vector<32x128xbf16>, vector<1x128xf32> -> vector<1x128xf32>
    %43 = arith.addf %40, %42 : vector<1x128xf32>
    %44 = vector.extract_strided_slice %43 {offsets = [0, 0], sizes = [1, 32], strides = [1, 1]} : vector<1x128xf32> to vector<1x32xf32>
    %45 = arith.negf %44 : vector<1x32xf32>
    %46 = math.exp %45 : vector<1x32xf32>
    %cst_15 = arith.constant 1.000000e+00 : f32
    %47 = vector.broadcast %cst_15 : f32 to vector<1x32xf32>
    %48 = arith.addf %47, %46 : vector<1x32xf32>
    %49 = arith.divf %47, %48 : vector<1x32xf32>
    %50 = vector.extract_strided_slice %43 {offsets = [0, 32], sizes = [1, 32], strides = [1, 1]} : vector<1x128xf32> to vector<1x32xf32>
    %51 = arith.negf %50 : vector<1x32xf32>
    %52 = math.exp %51 : vector<1x32xf32>
    %cst_16 = arith.constant 1.000000e+00 : f32
    %53 = vector.broadcast %cst_16 : f32 to vector<1x32xf32>
    %54 = arith.addf %53, %52 : vector<1x32xf32>
    %55 = arith.divf %53, %54 : vector<1x32xf32>
    %56 = vector.extract_strided_slice %43 {offsets = [0, 64], sizes = [1, 32], strides = [1, 1]} : vector<1x128xf32> to vector<1x32xf32>
    %57 = math.tanh %56 : vector<1x32xf32>
    %58 = vector.extract_strided_slice %43 {offsets = [0, 96], sizes = [1, 32], strides = [1, 1]} : vector<1x128xf32> to vector<1x32xf32>
    %59 = arith.negf %58 : vector<1x32xf32>
    %60 = math.exp %59 : vector<1x32xf32>
    %cst_17 = arith.constant 1.000000e+00 : f32
    %61 = vector.broadcast %cst_17 : f32 to vector<1x32xf32>
    %62 = arith.addf %61, %60 : vector<1x32xf32>
    %63 = arith.divf %61, %62 : vector<1x32xf32>
    %64 = arith.mulf %55, %37 : vector<1x32xf32>
    %65 = arith.mulf %49, %57 : vector<1x32xf32>
    %66 = arith.addf %64, %65 : vector<1x32xf32>
    %67 = math.tanh %66 : vector<1x32xf32>
    %68 = arith.mulf %63, %67 : vector<1x32xf32>
    %69 = vector.extract_strided_slice %7 {offsets = [2, 0], sizes = [1, 128], strides = [1, 1]} : vector<8x128xf32> to vector<1x128xf32>
    %70 = arith.truncf %68 : vector<1x32xf32> to vector<1x32xbf16>
    %cst_18 = arith.constant dense<0.000000e+00> : vector<1x128xf32>
    %71 = tpu.matmul %70, %8, %cst_18 {dimension_numbers = #tpu.dot_dimension_numbers<[1], [0], [0], [1], [0, 0, 1, 1], [], []>} : vector<1x32xbf16>, vector<32x128xbf16>, vector<1x128xf32> -> vector<1x128xf32>
    %72 = arith.addf %69, %71 : vector<1x128xf32>
    %73 = vector.extract_strided_slice %72 {offsets = [0, 0], sizes = [1, 32], strides = [1, 1]} : vector<1x128xf32> to vector<1x32xf32>
    %74 = arith.negf %73 : vector<1x32xf32>
    %75 = math.exp %74 : vector<1x32xf32>
    %cst_19 = arith.constant 1.000000e+00 : f32
    %76 = vector.broadcast %cst_19 : f32 to vector<1x32xf32>
    %77 = arith.addf %76, %75 : vector<1x32xf32>
    %78 = arith.divf %76, %77 : vector<1x32xf32>
    %79 = vector.extract_strided_slice %72 {offsets = [0, 32], sizes = [1, 32], strides = [1, 1]} : vector<1x128xf32> to vector<1x32xf32>
    %80 = arith.negf %79 : vector<1x32xf32>
    %81 = math.exp %80 : vector<1x32xf32>
    %cst_20 = arith.constant 1.000000e+00 : f32
    %82 = vector.broadcast %cst_20 : f32 to vector<1x32xf32>
    %83 = arith.addf %82, %81 : vector<1x32xf32>
    %84 = arith.divf %82, %83 : vector<1x32xf32>
    %85 = vector.extract_strided_slice %72 {offsets = [0, 64], sizes = [1, 32], strides = [1, 1]} : vector<1x128xf32> to vector<1x32xf32>
    %86 = math.tanh %85 : vector<1x32xf32>
    %87 = vector.extract_strided_slice %72 {offsets = [0, 96], sizes = [1, 32], strides = [1, 1]} : vector<1x128xf32> to vector<1x32xf32>
    %88 = arith.negf %87 : vector<1x32xf32>
    %89 = math.exp %88 : vector<1x32xf32>
    %cst_21 = arith.constant 1.000000e+00 : f32
    %90 = vector.broadcast %cst_21 : f32 to vector<1x32xf32>
    %91 = arith.addf %90, %89 : vector<1x32xf32>
    %92 = arith.divf %90, %91 : vector<1x32xf32>
    %93 = arith.mulf %84, %66 : vector<1x32xf32>
    %94 = arith.mulf %78, %86 : vector<1x32xf32>
    %95 = arith.addf %93, %94 : vector<1x32xf32>
    %96 = math.tanh %95 : vector<1x32xf32>
    %97 = arith.mulf %92, %96 : vector<1x32xf32>
    %98 = vector.extract_strided_slice %7 {offsets = [3, 0], sizes = [1, 128], strides = [1, 1]} : vector<8x128xf32> to vector<1x128xf32>
    %99 = arith.truncf %97 : vector<1x32xf32> to vector<1x32xbf16>
    %cst_22 = arith.constant dense<0.000000e+00> : vector<1x128xf32>
    %100 = tpu.matmul %99, %8, %cst_22 {dimension_numbers = #tpu.dot_dimension_numbers<[1], [0], [0], [1], [0, 0, 1, 1], [], []>} : vector<1x32xbf16>, vector<32x128xbf16>, vector<1x128xf32> -> vector<1x128xf32>
    %101 = arith.addf %98, %100 : vector<1x128xf32>
    %102 = vector.extract_strided_slice %101 {offsets = [0, 0], sizes = [1, 32], strides = [1, 1]} : vector<1x128xf32> to vector<1x32xf32>
    %103 = arith.negf %102 : vector<1x32xf32>
    %104 = math.exp %103 : vector<1x32xf32>
    %cst_23 = arith.constant 1.000000e+00 : f32
    %105 = vector.broadcast %cst_23 : f32 to vector<1x32xf32>
    %106 = arith.addf %105, %104 : vector<1x32xf32>
    %107 = arith.divf %105, %106 : vector<1x32xf32>
    %108 = vector.extract_strided_slice %101 {offsets = [0, 32], sizes = [1, 32], strides = [1, 1]} : vector<1x128xf32> to vector<1x32xf32>
    %109 = arith.negf %108 : vector<1x32xf32>
    %110 = math.exp %109 : vector<1x32xf32>
    %cst_24 = arith.constant 1.000000e+00 : f32
    %111 = vector.broadcast %cst_24 : f32 to vector<1x32xf32>
    %112 = arith.addf %111, %110 : vector<1x32xf32>
    %113 = arith.divf %111, %112 : vector<1x32xf32>
    %114 = vector.extract_strided_slice %101 {offsets = [0, 64], sizes = [1, 32], strides = [1, 1]} : vector<1x128xf32> to vector<1x32xf32>
    %115 = math.tanh %114 : vector<1x32xf32>
    %116 = vector.extract_strided_slice %101 {offsets = [0, 96], sizes = [1, 32], strides = [1, 1]} : vector<1x128xf32> to vector<1x32xf32>
    %117 = arith.negf %116 : vector<1x32xf32>
    %118 = math.exp %117 : vector<1x32xf32>
    %cst_25 = arith.constant 1.000000e+00 : f32
    %119 = vector.broadcast %cst_25 : f32 to vector<1x32xf32>
    %120 = arith.addf %119, %118 : vector<1x32xf32>
    %121 = arith.divf %119, %120 : vector<1x32xf32>
    %122 = arith.mulf %113, %95 : vector<1x32xf32>
    %123 = arith.mulf %107, %115 : vector<1x32xf32>
    %124 = arith.addf %122, %123 : vector<1x32xf32>
    %125 = math.tanh %124 : vector<1x32xf32>
    %126 = arith.mulf %121, %125 : vector<1x32xf32>
    %127 = vector.extract_strided_slice %7 {offsets = [4, 0], sizes = [1, 128], strides = [1, 1]} : vector<8x128xf32> to vector<1x128xf32>
    %128 = arith.truncf %126 : vector<1x32xf32> to vector<1x32xbf16>
    %cst_26 = arith.constant dense<0.000000e+00> : vector<1x128xf32>
    %129 = tpu.matmul %128, %8, %cst_26 {dimension_numbers = #tpu.dot_dimension_numbers<[1], [0], [0], [1], [0, 0, 1, 1], [], []>} : vector<1x32xbf16>, vector<32x128xbf16>, vector<1x128xf32> -> vector<1x128xf32>
    %130 = arith.addf %127, %129 : vector<1x128xf32>
    %131 = vector.extract_strided_slice %130 {offsets = [0, 0], sizes = [1, 32], strides = [1, 1]} : vector<1x128xf32> to vector<1x32xf32>
    %132 = arith.negf %131 : vector<1x32xf32>
    %133 = math.exp %132 : vector<1x32xf32>
    %cst_27 = arith.constant 1.000000e+00 : f32
    %134 = vector.broadcast %cst_27 : f32 to vector<1x32xf32>
    %135 = arith.addf %134, %133 : vector<1x32xf32>
    %136 = arith.divf %134, %135 : vector<1x32xf32>
    %137 = vector.extract_strided_slice %130 {offsets = [0, 32], sizes = [1, 32], strides = [1, 1]} : vector<1x128xf32> to vector<1x32xf32>
    %138 = arith.negf %137 : vector<1x32xf32>
    %139 = math.exp %138 : vector<1x32xf32>
    %cst_28 = arith.constant 1.000000e+00 : f32
    %140 = vector.broadcast %cst_28 : f32 to vector<1x32xf32>
    %141 = arith.addf %140, %139 : vector<1x32xf32>
    %142 = arith.divf %140, %141 : vector<1x32xf32>
    %143 = vector.extract_strided_slice %130 {offsets = [0, 64], sizes = [1, 32], strides = [1, 1]} : vector<1x128xf32> to vector<1x32xf32>
    %144 = math.tanh %143 : vector<1x32xf32>
    %145 = vector.extract_strided_slice %130 {offsets = [0, 96], sizes = [1, 32], strides = [1, 1]} : vector<1x128xf32> to vector<1x32xf32>
    %146 = arith.negf %145 : vector<1x32xf32>
    %147 = math.exp %146 : vector<1x32xf32>
    %cst_29 = arith.constant 1.000000e+00 : f32
    %148 = vector.broadcast %cst_29 : f32 to vector<1x32xf32>
    %149 = arith.addf %148, %147 : vector<1x32xf32>
    %150 = arith.divf %148, %149 : vector<1x32xf32>
    %151 = arith.mulf %142, %124 : vector<1x32xf32>
    %152 = arith.mulf %136, %144 : vector<1x32xf32>
    %153 = arith.addf %151, %152 : vector<1x32xf32>
    %154 = math.tanh %153 : vector<1x32xf32>
    %155 = arith.mulf %150, %154 : vector<1x32xf32>
    %156 = vector.extract_strided_slice %7 {offsets = [5, 0], sizes = [1, 128], strides = [1, 1]} : vector<8x128xf32> to vector<1x128xf32>
    %157 = arith.truncf %155 : vector<1x32xf32> to vector<1x32xbf16>
    %cst_30 = arith.constant dense<0.000000e+00> : vector<1x128xf32>
    %158 = tpu.matmul %157, %8, %cst_30 {dimension_numbers = #tpu.dot_dimension_numbers<[1], [0], [0], [1], [0, 0, 1, 1], [], []>} : vector<1x32xbf16>, vector<32x128xbf16>, vector<1x128xf32> -> vector<1x128xf32>
    %159 = arith.addf %156, %158 : vector<1x128xf32>
    %160 = vector.extract_strided_slice %159 {offsets = [0, 0], sizes = [1, 32], strides = [1, 1]} : vector<1x128xf32> to vector<1x32xf32>
    %161 = arith.negf %160 : vector<1x32xf32>
    %162 = math.exp %161 : vector<1x32xf32>
    %cst_31 = arith.constant 1.000000e+00 : f32
    %163 = vector.broadcast %cst_31 : f32 to vector<1x32xf32>
    %164 = arith.addf %163, %162 : vector<1x32xf32>
    %165 = arith.divf %163, %164 : vector<1x32xf32>
    %166 = vector.extract_strided_slice %159 {offsets = [0, 32], sizes = [1, 32], strides = [1, 1]} : vector<1x128xf32> to vector<1x32xf32>
    %167 = arith.negf %166 : vector<1x32xf32>
    %168 = math.exp %167 : vector<1x32xf32>
    %cst_32 = arith.constant 1.000000e+00 : f32
    %169 = vector.broadcast %cst_32 : f32 to vector<1x32xf32>
    %170 = arith.addf %169, %168 : vector<1x32xf32>
    %171 = arith.divf %169, %170 : vector<1x32xf32>
    %172 = vector.extract_strided_slice %159 {offsets = [0, 64], sizes = [1, 32], strides = [1, 1]} : vector<1x128xf32> to vector<1x32xf32>
    %173 = math.tanh %172 : vector<1x32xf32>
    %174 = vector.extract_strided_slice %159 {offsets = [0, 96], sizes = [1, 32], strides = [1, 1]} : vector<1x128xf32> to vector<1x32xf32>
    %175 = arith.negf %174 : vector<1x32xf32>
    %176 = math.exp %175 : vector<1x32xf32>
    %cst_33 = arith.constant 1.000000e+00 : f32
    %177 = vector.broadcast %cst_33 : f32 to vector<1x32xf32>
    %178 = arith.addf %177, %176 : vector<1x32xf32>
    %179 = arith.divf %177, %178 : vector<1x32xf32>
    %180 = arith.mulf %171, %153 : vector<1x32xf32>
    %181 = arith.mulf %165, %173 : vector<1x32xf32>
    %182 = arith.addf %180, %181 : vector<1x32xf32>
    %183 = math.tanh %182 : vector<1x32xf32>
    %184 = arith.mulf %179, %183 : vector<1x32xf32>
    %185 = vector.extract_strided_slice %7 {offsets = [6, 0], sizes = [1, 128], strides = [1, 1]} : vector<8x128xf32> to vector<1x128xf32>
    %186 = arith.truncf %184 : vector<1x32xf32> to vector<1x32xbf16>
    %cst_34 = arith.constant dense<0.000000e+00> : vector<1x128xf32>
    %187 = tpu.matmul %186, %8, %cst_34 {dimension_numbers = #tpu.dot_dimension_numbers<[1], [0], [0], [1], [0, 0, 1, 1], [], []>} : vector<1x32xbf16>, vector<32x128xbf16>, vector<1x128xf32> -> vector<1x128xf32>
    %188 = arith.addf %185, %187 : vector<1x128xf32>
    %189 = vector.extract_strided_slice %188 {offsets = [0, 0], sizes = [1, 32], strides = [1, 1]} : vector<1x128xf32> to vector<1x32xf32>
    %190 = arith.negf %189 : vector<1x32xf32>
    %191 = math.exp %190 : vector<1x32xf32>
    %cst_35 = arith.constant 1.000000e+00 : f32
    %192 = vector.broadcast %cst_35 : f32 to vector<1x32xf32>
    %193 = arith.addf %192, %191 : vector<1x32xf32>
    %194 = arith.divf %192, %193 : vector<1x32xf32>
    %195 = vector.extract_strided_slice %188 {offsets = [0, 32], sizes = [1, 32], strides = [1, 1]} : vector<1x128xf32> to vector<1x32xf32>
    %196 = arith.negf %195 : vector<1x32xf32>
    %197 = math.exp %196 : vector<1x32xf32>
    %cst_36 = arith.constant 1.000000e+00 : f32
    %198 = vector.broadcast %cst_36 : f32 to vector<1x32xf32>
    %199 = arith.addf %198, %197 : vector<1x32xf32>
    %200 = arith.divf %198, %199 : vector<1x32xf32>
    %201 = vector.extract_strided_slice %188 {offsets = [0, 64], sizes = [1, 32], strides = [1, 1]} : vector<1x128xf32> to vector<1x32xf32>
    %202 = math.tanh %201 : vector<1x32xf32>
    %203 = vector.extract_strided_slice %188 {offsets = [0, 96], sizes = [1, 32], strides = [1, 1]} : vector<1x128xf32> to vector<1x32xf32>
    %204 = arith.negf %203 : vector<1x32xf32>
    %205 = math.exp %204 : vector<1x32xf32>
    %cst_37 = arith.constant 1.000000e+00 : f32
    %206 = vector.broadcast %cst_37 : f32 to vector<1x32xf32>
    %207 = arith.addf %206, %205 : vector<1x32xf32>
    %208 = arith.divf %206, %207 : vector<1x32xf32>
    %209 = arith.mulf %200, %182 : vector<1x32xf32>
    %210 = arith.mulf %194, %202 : vector<1x32xf32>
    %211 = arith.addf %209, %210 : vector<1x32xf32>
    %212 = math.tanh %211 : vector<1x32xf32>
    %213 = arith.mulf %208, %212 : vector<1x32xf32>
    %214 = vector.extract_strided_slice %7 {offsets = [7, 0], sizes = [1, 128], strides = [1, 1]} : vector<8x128xf32> to vector<1x128xf32>
    %215 = arith.truncf %213 : vector<1x32xf32> to vector<1x32xbf16>
    %cst_38 = arith.constant dense<0.000000e+00> : vector<1x128xf32>
    %216 = tpu.matmul %215, %8, %cst_38 {dimension_numbers = #tpu.dot_dimension_numbers<[1], [0], [0], [1], [0, 0, 1, 1], [], []>} : vector<1x32xbf16>, vector<32x128xbf16>, vector<1x128xf32> -> vector<1x128xf32>
    %217 = arith.addf %214, %216 : vector<1x128xf32>
    %218 = vector.extract_strided_slice %217 {offsets = [0, 0], sizes = [1, 32], strides = [1, 1]} : vector<1x128xf32> to vector<1x32xf32>
    %219 = arith.negf %218 : vector<1x32xf32>
    %220 = math.exp %219 : vector<1x32xf32>
    %cst_39 = arith.constant 1.000000e+00 : f32
    %221 = vector.broadcast %cst_39 : f32 to vector<1x32xf32>
    %222 = arith.addf %221, %220 : vector<1x32xf32>
    %223 = arith.divf %221, %222 : vector<1x32xf32>
    %224 = vector.extract_strided_slice %217 {offsets = [0, 32], sizes = [1, 32], strides = [1, 1]} : vector<1x128xf32> to vector<1x32xf32>
    %225 = arith.negf %224 : vector<1x32xf32>
    %226 = math.exp %225 : vector<1x32xf32>
    %cst_40 = arith.constant 1.000000e+00 : f32
    %227 = vector.broadcast %cst_40 : f32 to vector<1x32xf32>
    %228 = arith.addf %227, %226 : vector<1x32xf32>
    %229 = arith.divf %227, %228 : vector<1x32xf32>
    %230 = vector.extract_strided_slice %217 {offsets = [0, 64], sizes = [1, 32], strides = [1, 1]} : vector<1x128xf32> to vector<1x32xf32>
    %231 = math.tanh %230 : vector<1x32xf32>
    %232 = vector.extract_strided_slice %217 {offsets = [0, 96], sizes = [1, 32], strides = [1, 1]} : vector<1x128xf32> to vector<1x32xf32>
    %233 = arith.negf %232 : vector<1x32xf32>
    %234 = math.exp %233 : vector<1x32xf32>
    %cst_41 = arith.constant 1.000000e+00 : f32
    %235 = vector.broadcast %cst_41 : f32 to vector<1x32xf32>
    %236 = arith.addf %235, %234 : vector<1x32xf32>
    %237 = arith.divf %235, %236 : vector<1x32xf32>
    %238 = arith.mulf %229, %211 : vector<1x32xf32>
    %239 = arith.mulf %223, %231 : vector<1x32xf32>
    %240 = arith.addf %238, %239 : vector<1x32xf32>
    %241 = math.tanh %240 : vector<1x32xf32>
    %242 = arith.mulf %237, %241 : vector<1x32xf32>
    %243 = tpu.concatenate %39, %68, %97, %126, %155, %184, %213, %242 in 0 : vector<1x32xf32>, vector<1x32xf32>, vector<1x32xf32>, vector<1x32xf32>, vector<1x32xf32>, vector<1x32xf32>, vector<1x32xf32>, vector<1x32xf32> -> vector<8x32xf32>
    %244 = vector.shape_cast %243 : vector<8x32xf32> to vector<1x8x32xf32>
    %cst_42 = arith.constant dense<0.000000e+00> : vector<1xf32>
    %245 = vector.multi_reduction <add>, %244, %cst_42 [1, 2] : vector<1x8x32xf32> to vector<1xf32>
    %246 = vector.shape_cast %245 : vector<1xf32> to vector<1x1x1xf32>
    %247 = vector.extract %246[0, 0, 0] : f32 from vector<1x1x1xf32>
    %248 = vector.broadcast %247 : f32 to vector<1x1xf32>
    %cst_43 = arith.constant 2.560000e+02 : f32
    %249 = vector.broadcast %cst_43 : f32 to vector<1x1xf32>
    %250 = arith.divf %248, %249 : vector<1x1xf32>
    %251 = vector.broadcast %250 : vector<1x1xf32> to vector<8x32xf32>
    %252 = arith.subf %243, %251 : vector<8x32xf32>
    %253 = arith.mulf %252, %252 : vector<8x32xf32>
    %254 = vector.shape_cast %253 : vector<8x32xf32> to vector<1x8x32xf32>
    %cst_44 = arith.constant dense<0.000000e+00> : vector<1xf32>
    %255 = vector.multi_reduction <add>, %254, %cst_44 [1, 2] : vector<1x8x32xf32> to vector<1xf32>
    %256 = vector.shape_cast %255 : vector<1xf32> to vector<1x1x1xf32>
    %257 = vector.extract %256[0, 0, 0] : f32 from vector<1x1x1xf32>
    %258 = vector.broadcast %257 : f32 to vector<1x1xf32>
    %cst_45 = arith.constant 2.560000e+02 : f32
    %259 = vector.broadcast %cst_45 : f32 to vector<1x1xf32>
    %260 = arith.divf %258, %259 : vector<1x1xf32>
    %261 = vector.broadcast %250 : vector<1x1xf32> to vector<8x32xf32>
    %262 = arith.subf %243, %261 : vector<8x32xf32>
    %cst_46 = arith.constant 9.99999974E-6 : f32
    %263 = vector.broadcast %cst_46 : f32 to vector<1x1xf32>
    %264 = arith.addf %260, %263 : vector<1x1xf32>
    %265 = math.rsqrt %264 : vector<1x1xf32>
    %266 = vector.broadcast %265 : vector<1x1xf32> to vector<8x32xf32>
    %267 = arith.mulf %262, %266 : vector<8x32xf32>
    %c0_47 = arith.constant 0 : index
    %c0_48 = arith.constant 0 : index
    %268 = vector.load %arg5[%c0_47, %c0_48] : memref<8x32xf32, #tpu.memory_space<vmem>>, vector<8x32xf32>
    %269 = arith.mulf %267, %268 : vector<8x32xf32>
    %c0_49 = arith.constant 0 : index
    %c0_50 = arith.constant 0 : index
    %270 = vector.load %arg6[%c0_49, %c0_50] : memref<8x32xf32, #tpu.memory_space<vmem>>, vector<8x32xf32>
    %271 = arith.addf %269, %270 : vector<8x32xf32>
    %272 = arith.truncf %271 : vector<8x32xf32> to vector<8x32xbf16>
    %c0_51 = arith.constant 0 : index
    %c0_52 = arith.constant 0 : index
    %273 = vector.load %arg7[%c0_51, %c0_52] : memref<32x16xbf16, #tpu.memory_space<vmem>>, vector<32x16xbf16>
    %cst_53 = arith.constant dense<0.000000e+00> : vector<8x16xf32>
    %274 = tpu.matmul %272, %273, %cst_53 {dimension_numbers = #tpu.dot_dimension_numbers<[1], [0], [0], [1], [0, 0, 1, 1], [], []>} : vector<8x32xbf16>, vector<32x16xbf16>, vector<8x16xf32> -> vector<8x16xf32>
    %c0_54 = arith.constant 0 : index
    %c0_55 = arith.constant 0 : index
    %275 = vector.load %arg8[%c0_54, %c0_55] : memref<1x16xf32, #tpu.memory_space<vmem>>, vector<1x16xf32>
    %276 = vector.broadcast %275 : vector<1x16xf32> to vector<8x16xf32>
    %277 = arith.addf %274, %276 : vector<8x16xf32>
    %cst_56 = arith.constant 0.000000e+00 : f32
    %278 = vector.broadcast %cst_56 : f32 to vector<8x16xf32>
    %279 = arith.maximumf %277, %278 : vector<8x16xf32>
    %280 = arith.truncf %279 : vector<8x16xf32> to vector<8x16xbf16>
    %c0_57 = arith.constant 0 : index
    %c0_58 = arith.constant 0 : index
    %281 = vector.load %arg9[%c0_57, %c0_58] : memref<16x4xbf16, #tpu.memory_space<vmem>>, vector<16x4xbf16>
    %cst_59 = arith.constant dense<0.000000e+00> : vector<8x4xf32>
    %282 = tpu.matmul %280, %281, %cst_59 {dimension_numbers = #tpu.dot_dimension_numbers<[1], [0], [0], [1], [0, 0, 1, 1], [], []>} : vector<8x16xbf16>, vector<16x4xbf16>, vector<8x4xf32> -> vector<8x4xf32>
    %c0_60 = arith.constant 0 : index
    %c0_61 = arith.constant 0 : index
    %283 = vector.load %arg10[%c0_60, %c0_61] : memref<1x4xf32, #tpu.memory_space<vmem>>, vector<1x4xf32>
    %284 = vector.broadcast %283 : vector<1x4xf32> to vector<8x4xf32>
    %285 = arith.addf %282, %284 : vector<8x4xf32>
    %cst_62 = arith.constant 0.000000e+00 : f32
    %286 = vector.broadcast %cst_62 : f32 to vector<8x4xf32>
    %287 = arith.maximumf %285, %286 : vector<8x4xf32>
    %cst_63 = arith.constant dense<0.000000e+00> : vector<4xf32>
    %288 = vector.multi_reduction <add>, %287, %cst_63 [0] : vector<8x4xf32> to vector<4xf32>
    %289 = vector.shape_cast %288 : vector<4xf32> to vector<1x4xf32>
    %cst_64 = arith.constant 8.000000e+00 : f32
    %290 = vector.broadcast %cst_64 : f32 to vector<1x4xf32>
    %291 = arith.divf %289, %290 : vector<1x4xf32>
    %c0_65 = arith.constant 0 : index
    %c0_66 = arith.constant 0 : index
    %c0_67 = arith.constant 0 : index
    %292 = vector.load %arg11[%c0_65, %c0_66, %c0_67] : memref<1x1x4xf32, #tpu.memory_space<vmem>>, vector<1x1x4xf32>
    %293 = vector.shape_cast %292 : vector<1x1x4xf32> to vector<1x4xf32>
    %294 = vector.shape_cast %291 : vector<1x4xf32> to vector<1x1x4xf32>
    tpu.vector_store %arg11[%c0_65, %c0_66, %c0_67], %294 {strides = array<i32>} : memref<1x1x4xf32, #tpu.memory_space<vmem>>, vector<1x1x4xf32>,
    return
  }
  func.func @transform_0(%arg0: i32) -> (i32, i32, i32) {
    %c0_i32 = arith.constant 0 : i32
    %c0_i32_0 = arith.constant 0 : i32
    %c0_i32_1 = arith.constant 0 : i32
    return %arg0, %c0_i32, %c0_i32_0 : i32, i32, i32
  }
  func.func @transform_1(%arg0: i32) -> (i32, i32) {
    %c0_i32 = arith.constant 0 : i32
    %c0_i32_0 = arith.constant 0 : i32
    %c0_i32_1 = arith.constant 0 : i32
    return %c0_i32, %c0_i32_0 : i32, i32
  }
  func.func @transform_2(%arg0: i32) -> (i32, i32) {
    %c0_i32 = arith.constant 0 : i32
    %c0_i32_0 = arith.constant 0 : i32
    %c0_i32_1 = arith.constant 0 : i32
    return %c0_i32, %c0_i32_0 : i32, i32
  }
  func.func @transform_3(%arg0: i32) -> (i32, i32) {
    %c0_i32 = arith.constant 0 : i32
    %c0_i32_0 = arith.constant 0 : i32
    %c0_i32_1 = arith.constant 0 : i32
    return %c0_i32, %c0_i32_0 : i32, i32
  }
  func.func @transform_4(%arg0: i32) -> (i32, i32) {
    %c0_i32 = arith.constant 0 : i32
    %c0_i32_0 = arith.constant 0 : i32
    %c0_i32_1 = arith.constant 0 : i32
    return %c0_i32, %c0_i32_0 : i32, i32
  }
  func.func @transform_5(%arg0: i32) -> (i32, i32) {
    %c0_i32 = arith.constant 0 : i32
    %c0_i32_0 = arith.constant 0 : i32
    %c0_i32_1 = arith.constant 0 : i32
    return %c0_i32, %c0_i32_0 : i32, i32
  }
  func.func @transform_6(%arg0: i32) -> (i32, i32) {
    %c0_i32 = arith.constant 0 : i32
    %c0_i32_0 = arith.constant 0 : i32
    %c0_i32_1 = arith.constant 0 : i32
    return %c0_i32, %c0_i32_0 : i32, i32
  }
  func.func @transform_7(%arg0: i32) -> (i32, i32) {
    %c0_i32 = arith.constant 0 : i32
    %c0_i32_0 = arith.constant 0 : i32
    %c0_i32_1 = arith.constant 0 : i32
    return %c0_i32, %c0_i32_0 : i32, i32
  }
  func.func @transform_8(%arg0: i32) -> (i32, i32) {
    %c0_i32 = arith.constant 0 : i32
    %c0_i32_0 = arith.constant 0 : i32
    %c0_i32_1 = arith.constant 0 : i32
    return %c0_i32, %c0_i32_0 : i32, i32
  }
  func.func @transform_9(%arg0: i32) -> (i32, i32) {
    %c0_i32 = arith.constant 0 : i32
    %c0_i32_0 = arith.constant 0 : i32
    %c0_i32_1 = arith.constant 0 : i32
    return %c0_i32, %c0_i32_0 : i32, i32
  }
  func.func @transform_10(%arg0: i32) -> (i32, i32, i32) {
    %c0_i32 = arith.constant 0 : i32
    %c0_i32_0 = arith.constant 0 : i32
    %c0_i32_1 = arith.constant 0 : i32
    return %arg0, %c0_i32, %c0_i32_0 : i32, i32, i32
  }
}

</mosaic_0001>

<bundles_post_ra>
// kernel: forward.3
= control target key start
LH: loop header
LB: loop body
LE: loop exit
PB: predicated region body
PF: predicated region fallthrough
CT: control target
= control target key end

     0   :  { %15 = vsyncpa [#allocation3], 0  ;;  %s2002_s0 = inlined_call_operand.vmem [shape: f32[2,8,32], index: 0, kind: input, shape index: {}]   ;;  %s2003_s1 = inlined_call_operand.vmem [shape: bf16[32,128], index: 1, kind: input, shape index: {}]   ;;  %s2004_s2 = inlined_call_operand.vmem [shape: bf16[32,128], index: 2, kind: input, shape index: {}]   ;;  %s2005_s3 = inlined_call_operand.vmem [shape: f32[1,128], index: 3, kind: input, shape index: {}]   ;;  %s2006_s4 = inlined_call_operand.vmem [shape: f32[8,32], index: 4, kind: input, shape index: {}]   ;;  %s2007_s5 = inlined_call_operand.vmem [shape: f32[8,32], index: 5, kind: input, shape index: {}]   ;;  %s2008_s6 = inlined_call_operand.vmem [shape: bf16[32,16], index: 6, kind: input, shape index: {}]   ;;  %s2009_s7 = inlined_call_operand.vmem [shape: f32[1,16], index: 7, kind: input, shape index: {}]   ;;  %s2010_s8 = inlined_call_operand.vmem [shape: bf16[16,4], index: 8, kind: input, shape index: {}]   ;;  %s2011_s9 = inlined_call_operand.vmem [shape: f32[1,4], index: 9, kind: input, shape index: {}]   ;;  %s2012_s10 = inlined_call_operand.hbm [shape: f32[2,1,4], index: 10, kind: output, shape index: {}]  }
   0x1   :  { %17 = vsyncpa [#allocation3 + $0x1], 0  ;;  %s1743_s13 = smov 0   ;;  %s1745_s14 = smov 0  }
   0x2   :  { %s1747_s15 = smov 0   ;;  %s1749_s16 = smov 0  }
   0x3 LB: > { %s1764_s17 = sadd.s32 4294967295, %s1679_s16   ;;  %s1341_s18 = sadd.s32 4294967294, %s1679_s16   ;;  %s1679_s16 = sphi %s1749_s16, %s2018_s16   ;;  %s1675_s15 = sphi %s1747_s15, %s2017_s15   ;;  %s1671_s14 = sphi %s1745_s14, %s2016_s14   ;;  %s1667_s13 = sphi %s1743_s13, %s2015_s13  }
   0x4   : > { %s1768_s19 = sadd.s32 1, %s1679_s16   ;;  %s245_s20 = sadd.s32 1, %s1675_s15 }
   0x5   : > { %s242_s21 = ssub.s32 %s1679_s16, %s1768_s19  ;;  %p255_p0 = scmp.ne.s32.totalorder %s1675_s15, %s1671_s14 }
   0x6   : > { %p243_p1 = scmp.eq.s32.totalorder %s242_s21, 0  ;;  %p256_p2 = scmp.eq.s32.totalorder %s1764_s17, 1 }
   0x7   : > { %p261_p3 = scmp.ne.s32.totalorder %s1671_s14, %s1667_s13  ;;  %p262_p4 = scmp.eq.s32.totalorder %s1341_s18, 1 }
   0x8   : > { %s1779_s22 = scalar_select %p243_p1, %s1675_s15, %s245_s20  }
   0x9   : > { %p1781_p5 = por %p256_p2, %p255_p0  ;;  %p1785_p6 = por %p262_p4, %p261_p3 }
   0xa   : > { %p1344_p7 = scmp.ge.s32.totalorder %s1679_s16, 1  ;;  %p314_p8 = scmp.lt.s32.totalorder %s1679_s16, 3 }
   0xc   : > { %p315_p9 = pnand %p1344_p7, %p314_p8 }
   0xd   : > { %v1544_v0 = vld [vmem:[%s2003_s1] sm:$0xff] (!%p315_p9)   ;;  %v1681_v1 = vmov (!%p315_p9), 0.0   ;;  %v1546_v3 = vld [vmem:[%s2003_s1 + $0x8] sm:$0xff] (!%p315_p9)   ;;  %vm1682_vm0 = vmmov (!%p315_p9), 0   ;;  %p350_p10 = scmp.lt.s32.totalorder (!%p315_p9), %s1764_s17, 1  ;;  %vm380_vm1 = vcmask (!%p315_p9), 261120  }
   0xe   : > { %318 = sbr.rel (%p315_p9) target bundleno = 6825 (0x1aa9), region = 60  ;;  %1409 = vmatprep.subr.bf16.mxu0 (!%p315_p9), %v1681_v1  ;;  %1417 = vmatprep.subr.bf16.mxu1 (!%p315_p9), %v1681_v1  ;;  %v1799_v2 = vld [vmem:[%s2004_s2] sm:$0xff] (!%p315_p9)   ;;  %v1812_v4 = vld [vmem:[%s2004_s2 + $0x8] sm:$0xff] (!%p315_p9)   ;;  %v1683_v7 = vmov (!%p315_p9), 0   ;;  %s1684_s29 = smov (!%p315_p9), 64   ;;  %vm1065_vm2 = vcmask (!%p315_p9), 1040384  }
   0xf   : > { %1410 = vmatpush3.bf16.msra.mxu0 (!%p315_p9), %v1544_v0  ;;  %1413 = vmatprep.mubr.msk.bf16.mxu0 (!%p315_p9), %vm1682_vm0, %v1681_v1  ;;  %v1346_v8 = vld [vmem:[%s2005_s3] ss:$0 sm:$0xff] (!%p315_p9)  ;;  %s1685_s30 = smov (!%p315_p9), 32   ;;  %vm1067_vm3 = vcmask (!%p315_p9), 1041408   ;;  %vm1069_vm4 = vcmask (!%p315_p9), 1042432   ;;  %vm1071_vm5 = vcmask (!%p315_p9), 1043456  }
  0x10   : > { %1418 = vmatpush3.bf16.msra.mxu1 (!%p315_p9), %v1799_v2  ;;  %1411 = vmatprep.subr.bf16.mxu0 (!%p315_p9), %v1681_v1  ;;  %vm1073_vm6 = vcmask (!%p315_p9), 1044480   ;;  %vm1075_vm7 = vcmask (!%p315_p9), 1045504   ;;  %vm1077_vm8 = vcmask (!%p315_p9), 1046528   ;;  %vm1216_vm9 = vcmask (!%p315_p9), 130048   ;;  %s1374_s27 = sshll.u32 (!%p315_p9), %s1764_s17, 4 }
  0x11   : > { %1419 = vmatprep.subr.bf16.mxu1 (!%p315_p9), %v1681_v1  ;;  %1421 = vmatprep.mubr.msk.bf16.mxu1 (!%p315_p9), %vm1682_vm0, %v1681_v1  ;;  %vm1261_vm10 = vcmask (!%p315_p9), 31744   ;;  %vm1271_vm11 = vcmask (!%p315_p9), 24576  }
  0x13   : > { %1412 = vmatpush3.bf16.msra.mxu0 (!%p315_p9), %v1546_v3 }
  0x14   : > { %1420 = vmatpush3.bf16.msra.mxu1 (!%p315_p9), %v1812_v4  ;;  %1425 = vmatprep.subr.bf16.mxu0 (!%p315_p9), %v1681_v1 }
  0x15   : > { %s351_s18 = scalar_select %p350_p10, %s1764_s17, 1  ;;  %1433 = vmatprep.subr.bf16.mxu1 %v1681_v1 }
  0x16   : > { %s1687_s17 = smov [#allocation2]  }
  0x17   : > { %s1345_s20 = sshll.u32 %s351_s18, 3  ;;  %1422 = vmatmul.mubr.bf16.vlgmr.msra.gmra.mrb[0].mxu1 %v1683_v7  ;;  %s1686_s18 = smov 96  }
  0x18   : > { %s353_s26 = scalar_lea.vmem %s2002_s0, %s1345_s20  ;;  %1434 = vmatpush3.bf16.msra.mxu1 %v1799_v2  ;;  %1437 = vmatprep.mubr.msk.bf16.mxu1 %vm1682_vm0, %v1681_v1  ;;  %s1621_s25 = sshll.u32 %s1687_s17, 4  ;;  %s1622_s25 = int_to_ptr.vmem [resolvable:$false] %s1621_s25 }
  0x19   : > { %v355_v5 = vld [vmem:[%s353_s26] sm:$0xff]  ;;  %1435 = vmatprep.subr.bf16.mxu1 %v1681_v1  ;;  %s1623_s26 = scalar_lea.vmem %s1622_s25, 32 }
  0x1a   : > { %v356_v6 = vpack.c.bf16 %v355_v5, %v355_v5 }
  0x1c   : > { %1414 = vmatmul.mubr.msk.bf16.vlgmr.msra.gmra.mrb[0].mxu0 %vm380_vm1, %v356_v6  ;;  %1436 = vmatpush3.bf16.msra.mxu1 %v1812_v4 }
  0x1d   : > { %1426 = vmatpush3.bf16.msra.mxu0 %v1799_v2  ;;  %1429 = vmatprep.mubr.msk.bf16.mxu0 %vm1682_vm0, %v1681_v1 }
  0x1e   : > { %1427 = vmatprep.subr.bf16.mxu0 %v1681_v1  ;;  %1449 = vmatprep.subr.bf16.mxu1 %v1681_v1 }
  0x21   : > { %1428 = vmatpush3.bf16.msra.mxu0 %v1812_v4 }
  0x22   : > { %1441 = vmatprep.subr.bf16.mxu0 %v1681_v1 }
  0xea   : > { %v477_v9 = vpop.f32.mrb[0].mxu1 }
  0xeb   : > { %v1423_v11 = vpop.f32.mrb[1].mxu1 }
  0xec   : > { %v480_v14 = vpop.f32.mrb[2].mxu1 }
  0xed   : > { %v1424_v16 = vpop.f32.mrb[3].mxu1 }
  0xef   : > { %v418_v10 = vpop.f32.mrb[0].mxu0 }
  0xf0   : > { %v1840_v12 = vadd.f32 %v1346_v8, %v418_v10  ;;  %v1415_v13 = vpop.f32.mrb[1].mxu0 }
  0xf1   : > { %v421_v15 = vpop.f32.mrb[2].mxu0 }
  0xf2   : > { %v483_v17 = vadd.f32 %v477_v9, %v1840_v12  ;;  %v1416_v18 = vpop.f32.mrb[3].mxu0 }
  0xf4   : > { %1551 = vtanh.f32 %v483_v17  ;;  %v1352_v20 = vmul.f32 -1.442695, %v483_v17 }
  0xf6   : > { %1553 = vpow2.f32 %v1352_v20 }
  0xfe   : > { %v1552_v19 = vpop.eup %1551 }
  0xff   : > { %493 = vrot.lane.b32.xlu0 %v1552_v19, %s1684_s29 }
 0x100   : > { %v1554_v21 = vpop.eup %1553 }
 0x101   : > { %v487_v22 = vadd.f32 1.0, %v1554_v21 }
 0x103   : > { %1555 = vrcp.f32 %v487_v22 }
 0x10d   : > { %v1556_v23 = vpop.eup %1555 }
 0x10e   : > { %v491_v26 = vmul.f32 0.0, %v1556_v23 }
 0x171   : > { %v494_v24 = vpop.permute.xlu0 %493 }
 0x172   : > { %v496_v25 = vmul.f32 %v1556_v23, %v494_v24 }
 0x174   : > { %498 = vrot.lane.b32.xlu0 %v496_v25, %s1685_s30 }
 0x1e6   : > { %v499_v27 = vpop.permute.xlu0 %498 }
 0x1e7   : > { %v501_v28 = vadd.f32 %v499_v27, %v491_v26 }
 0x1e9   : > { %1557 = vtanh.f32 %v501_v28  ;;  %v567_v47 = vrot.slane %v501_v28, 7 }
 0x1f3   : > { %v1558_v29 = vpop.eup %1557 }
 0x1f4   : > { %504 = vrot.lane.b32.xlu1 %v1558_v29, %s1684_s29 }
 0x266   : > { %v505_v30 = vpop.permute.xlu1 %504 }
 0x267   : > { %v1846_v31 = vmul.f32 %v1556_v23, %v505_v30 }
 0x269   : > { %v508_v32 = vpack.c.bf16 %v1846_v31, %v1846_v31 }
 0x26b   : > { %510 = vrot.lane.b32.xlu1 %v508_v32, %s1685_s30 }
 0x2dd   : > { %v511_v33 = vpop.permute.xlu1 %510 }
 0x2de   : > { %1430 = vmatmul.mubr.msk.bf16.vlgmr.msra.gmra.mrb[4].mxu0 %vm380_vm1, %v511_v33 }
 0x2df   : > { %1442 = vmatpush3.bf16.msra.mxu0 %v1799_v2  ;;  %1445 = vmatprep.mubr.msk.bf16.mxu0 %vm1682_vm0, %v1681_v1 }
 0x2e0   : > { %1443 = vmatprep.subr.bf16.mxu0 %v1681_v1 }
 0x2e3   : > { %1444 = vmatpush3.bf16.msra.mxu0 %v1812_v4 }
 0x2e4   : > { %1457 = vmatprep.subr.bf16.mxu0 %v1681_v1 }
 0x3b1   : > { %v549_v34 = vpop.f32.mrb[4].mxu0 }
 0x3b2   : > { %v556_v35 = vrot.slane %v549_v34, 7  ;;  %v1431_v36 = vpop.f32.mrb[5].mxu0 }
 0x3b3   : > { %v552_v37 = vpop.f32.mrb[6].mxu0 }
 0x3b4   : > { %v558_v38 = vadd.f32 %v556_v35, %v1840_v12  ;;  %v1432_v39 = vpop.f32.mrb[7].mxu0 }
 0x3b6   : > { %1559 = vtanh.f32 %v558_v38  ;;  %v1354_v41 = vmul.f32 -1.442695, %v558_v38 }
 0x3b8   : > { %1561 = vpow2.f32 %v1354_v41 }
 0x3c0   : > { %v1560_v40 = vpop.eup %1559 }
 0x3c1   : > { %571 = vrot.lane.b32.xlu0 %v1560_v40, %s1684_s29 }
 0x3c2   : > { %v1562_v42 = vpop.eup %1561 }
 0x3c3   : > { %v562_v43 = vadd.f32 1.0, %v1562_v42 }
 0x3c5   : > { %1563 = vrcp.f32 %v562_v43 }
 0x3cf   : > { %v1564_v44 = vpop.eup %1563 }
 0x3d0   : > { %v569_v48 = vmul.f32 %v1564_v44, %v567_v47 }
 0x433   : > { %v572_v45 = vpop.permute.xlu0 %571 }
 0x434   : > { %v574_v46 = vmul.f32 %v1564_v44, %v572_v45 }
 0x436   : > { %576 = vrot.lane.b32.xlu1 %v574_v46, %s1685_s30 }
 0x4a8   : > { %v577_v49 = vpop.permute.xlu1 %576 }
 0x4a9   : > { %v579_v50 = vadd.f32 %v577_v49, %v569_v48 }
 0x4ab   : > { %1565 = vtanh.f32 %v579_v50  ;;  %v647_v9 = vrot.slane %v579_v50, 7 }
 0x4b5   : > { %v1566_v51 = vpop.eup %1565 }
 0x4b6   : > { %582 = vrot.lane.b32.xlu0 %v1566_v51, %s1684_s29 }
 0x528   : > { %v583_v52 = vpop.permute.xlu0 %582 }
 0x529   : > { %v585_v53 = vmul.f32 %v1564_v44, %v583_v52 }
 0x52b   : > { %v586_v54 = vpack.c.bf16 %v585_v53, %v585_v53  ;;  %v1066_v17 = vsel %vm1065_vm2, %v1846_v31, %v585_v53 }
 0x52d   : > { %v588_v55 = vshrl.u32 %v586_v54, 16 }
 0x52f   : > { %590 = vrot.lane.b32.xlu1 %v588_v55, %s1685_s30 }
 0x5a1   : > { %v591_v56 = vpop.permute.xlu1 %590 }
 0x5a2   : > { %1438 = vmatmul.mubr.msk.bf16.vlgmr.msra.gmra.mrb[4].mxu1 %vm380_vm1, %v591_v56 }
 0x5a3   : > { %1450 = vmatpush3.bf16.msra.mxu1 %v1799_v2  ;;  %1453 = vmatprep.mubr.msk.bf16.mxu1 %vm1682_vm0, %v1681_v1 }
 0x5a4   : > { %1451 = vmatprep.subr.bf16.mxu1 %v1681_v1 }
 0x5a7   : > { %1452 = vmatpush3.bf16.msra.mxu1 %v1812_v4 }
 0x5a8   : > { %1465 = vmatprep.subr.bf16.mxu1 %v1681_v1 }
 0x675   : > { %v629_v57 = vpop.f32.mrb[4].mxu1 }
 0x676   : > { %v636_v58 = vrot.slane %v629_v57, 6  ;;  %v1439_v59 = vpop.f32.mrb[5].mxu1 }
 0x677   : > { %v632_v60 = vpop.f32.mrb[6].mxu1 }
 0x678   : > { %v638_v61 = vadd.f32 %v636_v58, %v1840_v12  ;;  %v1440_v62 = vpop.f32.mrb[7].mxu1 }
 0x67a   : > { %1567 = vtanh.f32 %v638_v61  ;;  %v1356_v0 = vmul.f32 -1.442695, %v638_v61 }
 0x67c   : > { %1569 = vpow2.f32 %v1356_v0 }
 0x684   : > { %v1568_v63 = vpop.eup %1567 }
 0x685   : > { %651 = vrot.lane.b32.xlu0 %v1568_v63, %s1684_s29 }
 0x686   : > { %v1570_v3 = vpop.eup %1569 }
 0x687   : > { %v642_v5 = vadd.f32 1.0, %v1570_v3 }
 0x689   : > { %1571 = vrcp.f32 %v642_v5 }
 0x693   : > { %v1572_v6 = vpop.eup %1571 }
 0x694   : > { %v649_v10 = vmul.f32 %v1572_v6, %v647_v9 }
 0x6f7   : > { %v652_v7 = vpop.permute.xlu0 %651 }
 0x6f8   : > { %v654_v8 = vmul.f32 %v1572_v6, %v652_v7 }
 0x6fa   : > { %656 = vrot.lane.b32.xlu1 %v654_v8, %s1685_s30 }
 0x76c   : > { %v657_v11 = vpop.permute.xlu1 %656 }
 0x76d   : > { %v659_v13 = vadd.f32 %v657_v11, %v649_v10 }
 0x76f   : > { %1573 = vtanh.f32 %v659_v13  ;;  %v726_v35 = vrot.slane %v659_v13, 7 }
 0x779   : > { %v1574_v14 = vpop.eup %1573 }
 0x77a   : > { %662 = vrot.lane.b32.xlu0 %v1574_v14, %s1684_s29 }
 0x7ec   : > { %v663_v15 = vpop.permute.xlu0 %662 }
 0x7ed   : > { %v665_v16 = vmul.f32 %v1572_v6, %v663_v15 }
 0x7ef   : > { %v666_v18 = vpack.c.bf16 %v665_v16, %v665_v16  ;;  %v1068_v19 = vsel %vm1067_vm3, %v1066_v17, %v665_v16 }
 0x7f1   : > { %v668_v20 = vrot.slane %v666_v18, 1 }
 0x7f3   : > { %669 = vrot.lane.b32.xlu1 %v668_v20, %s1685_s30 }
 0x865   : > { %v670_v21 = vpop.permute.xlu1 %669 }
 0x866   : > { %1446 = vmatmul.mubr.msk.bf16.vlgmr.msra.gmra.mrb[8].mxu0 %vm380_vm1, %v670_v21 }
 0x867   : > { %1458 = vmatpush3.bf16.msra.mxu0 %v1799_v2  ;;  %1461 = vmatprep.mubr.msk.bf16.mxu0 %vm1682_vm0, %v1681_v1 }
 0x868   : > { %1459 = vmatprep.subr.bf16.mxu0 %v1681_v1 }
 0x86b   : > { %1460 = vmatpush3.bf16.msra.mxu0 %v1812_v4 }
 0x86c   : > { %1473 = vmatprep.subr.bf16.mxu0 %v1681_v1 }
 0x939   : > { %v708_v22 = vpop.f32.mrb[8].mxu0 }
 0x93a   : > { %v715_v23 = vrot.slane %v708_v22, 5  ;;  %v1447_v24 = vpop.f32.mrb[9].mxu0 }
 0x93b   : > { %v711_v25 = vpop.f32.mrb[10].mxu0 }
 0x93c   : > { %v717_v26 = vadd.f32 %v715_v23, %v1840_v12  ;;  %v1448_v27 = vpop.f32.mrb[11].mxu0 }
 0x93e   : > { %1575 = vtanh.f32 %v717_v26  ;;  %v1358_v29 = vmul.f32 -1.442695, %v717_v26 }
 0x940   : > { %1577 = vpow2.f32 %v1358_v29 }
 0x948   : > { %v1576_v28 = vpop.eup %1575 }
 0x949   : > { %730 = vrot.lane.b32.xlu0 %v1576_v28, %s1684_s29 }
 0x94a   : > { %v1578_v30 = vpop.eup %1577 }
 0x94b   : > { %v721_v31 = vadd.f32 1.0, %v1578_v30 }
 0x94d   : > { %1579 = vrcp.f32 %v721_v31 }
 0x957   : > { %v1580_v32 = vpop.eup %1579 }
 0x958   : > { %v728_v36 = vmul.f32 %v1580_v32, %v726_v35 }
 0x9bb   : > { %v731_v33 = vpop.permute.xlu0 %730 }
 0x9bc   : > { %v733_v34 = vmul.f32 %v1580_v32, %v731_v33 }
 0x9be   : > { %735 = vrot.lane.b32.xlu1 %v733_v34, %s1685_s30 }
 0xa30   : > { %v736_v37 = vpop.permute.xlu1 %735 }
 0xa31   : > { %v738_v38 = vadd.f32 %v736_v37, %v728_v36 }
 0xa33   : > { %1581 = vtanh.f32 %v738_v38  ;;  %v807_v60 = vrot.slane %v738_v38, 7 }
 0xa3d   : > { %v1582_v39 = vpop.eup %1581 }
 0xa3e   : > { %741 = vrot.lane.b32.xlu0 %v1582_v39, %s1684_s29 }
 0xab0   : > { %v742_v40 = vpop.permute.xlu0 %741 }
 0xab1   : > { %v744_v41 = vmul.f32 %v1580_v32, %v742_v40 }
 0xab3   : > { %v745_v42 = vpack.c.bf16 %v744_v41, %v744_v41  ;;  %v1070_v43 = vsel %vm1069_vm4, %v1068_v19, %v744_v41 }
 0xab5   : > { %v747_v44 = vshrl.u32 %v745_v42, 16 }
 0xab7   : > { %v749_v45 = vrot.slane %v747_v44, 1 }
 0xab9   : > { %750 = vrot.lane.b32.xlu1 %v749_v45, %s1685_s30 }
 0xb2b   : > { %v751_v46 = vpop.permute.xlu1 %750 }
 0xb2c   : > { %1454 = vmatmul.mubr.msk.bf16.vlgmr.msra.gmra.mrb[8].mxu1 %vm380_vm1, %v751_v46 }
 0xb2d   : > { %1466 = vmatpush3.bf16.msra.mxu1 %v1799_v2  ;;  %1469 = vmatprep.mubr.msk.bf16.mxu1 %vm1682_vm0, %v1681_v1 }
 0xb2e   : > { %1467 = vmatprep.subr.bf16.mxu1 %v1681_v1 }
 0xb31   : > { %1468 = vmatpush3.bf16.msra.mxu1 %v1812_v4 }
 0xb32   : > { %1481 = vmatprep.subr.bf16.mxu1 %v1681_v1 }
 0xbff   : > { %v789_v47 = vpop.f32.mrb[8].mxu1 }
 0xc00   : > { %v796_v48 = vrot.slane %v789_v47, 4  ;;  %v1455_v49 = vpop.f32.mrb[9].mxu1 }
 0xc01   : > { %v792_v50 = vpop.f32.mrb[10].mxu1 }
 0xc02   : > { %v798_v51 = vadd.f32 %v796_v48, %v1840_v12  ;;  %v1456_v52 = vpop.f32.mrb[11].mxu1 }
 0xc04   : > { %1583 = vtanh.f32 %v798_v51  ;;  %v1360_v54 = vmul.f32 -1.442695, %v798_v51 }
 0xc06   : > { %1585 = vpow2.f32 %v1360_v54 }
 0xc0e   : > { %v1584_v53 = vpop.eup %1583 }
 0xc0f   : > { %811 = vrot.lane.b32.xlu0 %v1584_v53, %s1684_s29 }
 0xc10   : > { %v1586_v55 = vpop.eup %1585 }
 0xc11   : > { %v802_v56 = vadd.f32 1.0, %v1586_v55 }
 0xc13   : > { %1587 = vrcp.f32 %v802_v56 }
 0xc1d   : > { %v1588_v57 = vpop.eup %1587 }
 0xc1e   : > { %v809_v61 = vmul.f32 %v1588_v57, %v807_v60 }
 0xc81   : > { %v812_v58 = vpop.permute.xlu0 %811 }
 0xc82   : > { %v814_v59 = vmul.f32 %v1588_v57, %v812_v58 }
 0xc84   : > { %816 = vrot.lane.b32.xlu1 %v814_v59, %s1685_s30 }
 0xcf6   : > { %v817_v62 = vpop.permute.xlu1 %816 }
 0xcf7   : > { %v819_v63 = vadd.f32 %v817_v62, %v809_v61 }
 0xcf9   : > { %1589 = vtanh.f32 %v819_v63  ;;  %v886_v22 = vrot.slane %v819_v63, 7 }
 0xd03   : > { %v1590_v0 = vpop.eup %1589 }
 0xd04   : > { %822 = vrot.lane.b32.xlu0 %v1590_v0, %s1684_s29 }
 0xd76   : > { %v823_v3 = vpop.permute.xlu0 %822 }
 0xd77   : > { %v825_v5 = vmul.f32 %v1588_v57, %v823_v3 }
 0xd79   : > { %v826_v6 = vpack.c.bf16 %v825_v5, %v825_v5  ;;  %v1072_v7 = vsel %vm1071_vm5, %v1070_v43, %v825_v5 }
 0xd7b   : > { %v828_v8 = vrot.slane %v826_v6, 2 }
 0xd7d   : > { %829 = vrot.lane.b32.xlu1 %v828_v8, %s1685_s30 }
 0xdef   : > { %v830_v9 = vpop.permute.xlu1 %829 }
 0xdf0   : > { %1462 = vmatmul.mubr.msk.bf16.vlgmr.msra.gmra.mrb[12].mxu0 %vm380_vm1, %v830_v9 }
 0xdf1   : > { %1474 = vmatpush3.bf16.msra.mxu0 %v1799_v2  ;;  %1477 = vmatprep.mubr.msk.bf16.mxu0 %vm1682_vm0, %v1681_v1 }
 0xdf2   : > { %1475 = vmatprep.subr.bf16.mxu0 %v1681_v1 }
 0xdf5   : > { %1476 = vmatpush3.bf16.msra.mxu0 %v1812_v4 }
 0xdf6   : > { %1489 = vmatprep.subr.bf16.mxu0 %v1681_v1 }
 0xec3   : > { %v868_v10 = vpop.f32.mrb[12].mxu0 }
 0xec4   : > { %v875_v11 = vrot.slane %v868_v10, 3  ;;  %v1463_v13 = vpop.f32.mrb[13].mxu0 }
 0xec5   : > { %v871_v14 = vpop.f32.mrb[14].mxu0 }
 0xec6   : > { %v877_v15 = vadd.f32 %v875_v11, %v1840_v12  ;;  %v1464_v16 = vpop.f32.mrb[15].mxu0 }
 0xec8   : > { %1591 = vtanh.f32 %v877_v15  ;;  %v1362_v2 = vmul.f32 -1.442695, %v877_v15 }
 0xeca   : > { %1593 = vpow2.f32 %v1362_v2 }
 0xed2   : > { %v1592_v17 = vpop.eup %1591 }
 0xed3   : > { %890 = vrot.lane.b32.xlu0 %v1592_v17, %s1684_s29 }
 0xed4   : > { %v1594_v18 = vpop.eup %1593 }
 0xed5   : > { %v881_v19 = vadd.f32 1.0, %v1594_v18 }
 0xed7   : > { %1595 = vrcp.f32 %v881_v19 }
 0xee1   : > { %v1596_v20 = vpop.eup %1595 }
 0xee2   : > { %v888_v23 = vmul.f32 %v1596_v20, %v886_v22 }
 0xf45   : > { %v891_v4 = vpop.permute.xlu0 %890 }
 0xf46   : > { %v893_v21 = vmul.f32 %v1596_v20, %v891_v4 }
 0xf48   : > { %895 = vrot.lane.b32.xlu1 %v893_v21, %s1685_s30 }
 0xfba   : > { %v896_v24 = vpop.permute.xlu1 %895 }
 0xfbb   : > { %v898_v25 = vadd.f32 %v896_v24, %v888_v23 }
 0xfbd   : > { %1597 = vtanh.f32 %v898_v25  ;;  %v967_v47 = vrot.slane %v898_v25, 7  ;;  %v1117_v25 = vld [vmem:[%s2006_s4] sm:$0xff] }
 0xfc7   : > { %v1598_v26 = vpop.eup %1597 }
 0xfc8   : > { %901 = vrot.lane.b32.xlu0 %v1598_v26, %s1684_s29 }
0x103a   : > { %v902_v27 = vpop.permute.xlu0 %901 }
0x103b   : > { %v904_v28 = vmul.f32 %v1596_v20, %v902_v27 }
0x103d   : > { %v905_v29 = vpack.c.bf16 %v904_v28, %v904_v28  ;;  %v1074_v30 = vsel %vm1073_vm6, %v1072_v7, %v904_v28 }
0x103f   : > { %v907_v31 = vshrl.u32 %v905_v29, 16 }
0x1041   : > { %v909_v32 = vrot.slane %v907_v31, 2 }
0x1043   : > { %910 = vrot.lane.b32.xlu1 %v909_v32, %s1685_s30  ;;  %v1123_v32 = vld [vmem:[%s2007_s5] sm:$0xff] }
0x10b5   : > { %v911_v33 = vpop.permute.xlu1 %910 }
0x10b6   : > { %1470 = vmatmul.mubr.msk.bf16.vlgmr.msra.gmra.mrb[12].mxu1 %vm380_vm1, %v911_v33  ;;  %v1548_v33 = vld [vmem:[%s2008_s6] sm:$0xff]  }
0x10b7   : > { %1485 = vmatprep.mubr.msk.bf16.mxu1 %vm1682_vm0, %v1681_v1  ;;  %1482 = vmatpush3.bf16.msra.mxu1 %v1548_v33 }
0x10b8   : > { %1483 = vmatprep.subr.bf16.mxu1 %v1681_v1 }
0x1189   : > { %v949_v34 = vpop.f32.mrb[12].mxu1 }
0x118a   : > { %v956_v35 = vrot.slane %v949_v34, 2  ;;  %v1471_v36 = vpop.f32.mrb[13].mxu1  ;;  %v1549_v34 = vld [vmem:[%s2008_s6 + $0x8] sm:$0xff]  }
0x118b   : > { %v952_v37 = vpop.f32.mrb[14].mxu1  ;;  %1484 = vmatpush3.bf16.msra.mxu1 %v1549_v34 }
0x118c   : > { %v958_v38 = vadd.f32 %v956_v35, %v1840_v12  ;;  %v1472_v39 = vpop.f32.mrb[15].mxu1 }
0x118e   : > { %1599 = vtanh.f32 %v958_v38  ;;  %v1364_v41 = vmul.f32 -1.442695, %v958_v38 }
0x1190   : > { %1601 = vpow2.f32 %v1364_v41 }
0x1198   : > { %v1600_v40 = vpop.eup %1599 }
0x1199   : > { %971 = vrot.lane.b32.xlu0 %v1600_v40, %s1684_s29 }
0x119a   : > { %v1602_v42 = vpop.eup %1601 }
0x119b   : > { %v962_v43 = vadd.f32 1.0, %v1602_v42 }
0x119d   : > { %1603 = vrcp.f32 %v962_v43 }
0x11a7   : > { %v1604_v44 = vpop.eup %1603 }
0x11a8   : > { %v969_v48 = vmul.f32 %v1604_v44, %v967_v47 }
0x120b   : > { %v972_v45 = vpop.permute.xlu0 %971 }
0x120c   : > { %v974_v46 = vmul.f32 %v1604_v44, %v972_v45  ;;  %v1550_v45 = vld [vmem:[%s2010_s8] sm:$0xff]  }
0x120e   : > { %976 = vrot.lane.b32.xlu1 %v974_v46, %s1685_s30 }
0x1280   : > { %v977_v49 = vpop.permute.xlu1 %976 }
0x1281   : > { %v979_v50 = vadd.f32 %v977_v49, %v969_v48 }
0x1283   : > { %1605 = vtanh.f32 %v979_v50  ;;  %v1046_v10 = vrot.slane %v979_v50, 7 }
0x128d   : > { %v1606_v51 = vpop.eup %1605 }
0x128e   : > { %982 = vrot.lane.b32.xlu0 %v1606_v51, %s1684_s29 }
0x1300   : > { %v983_v52 = vpop.permute.xlu0 %982 }
0x1301   : > { %v985_v53 = vmul.f32 %v1604_v44, %v983_v52 }
0x1303   : > { %v986_v54 = vpack.c.bf16 %v985_v53, %v985_v53  ;;  %v1076_v55 = vsel %vm1075_vm7, %v1074_v30, %v985_v53  ;;  %v1367_v53 = vld [vmem:[%s2009_s7] ss:$0 sm:$0xff] }
0x1305   : > { %v988_v56 = vrot.slane %v986_v54, 3 }
0x1307   : > { %989 = vrot.lane.b32.xlu1 %v988_v56, %s1685_s30 }
0x1379   : > { %v990_v57 = vpop.permute.xlu1 %989 }
0x137a   : > { %1478 = vmatmul.mubr.msk.bf16.vlgmr.msra.gmra.mrb[16].mxu0 %vm380_vm1, %v990_v57 }
0x137b   : > { %1491 = vmatprep.mubr.msk.bf16.mxu0 %vm1682_vm0, %v1681_v1  ;;  %1490 = vmatpush3.bf16.msra.mxu0 %v1550_v45 }
0x144d   : > { %v1028_v58 = vpop.f32.mrb[16].mxu0 }
0x144e   : > { %v1035_v59 = vrot.slane %v1028_v58, 1  ;;  %v1479_v60 = vpop.f32.mrb[17].mxu0 }
0x144f   : > { %v1031_v61 = vpop.f32.mrb[18].mxu0 }
0x1450   : > { %v1037_v62 = vadd.f32 %v1035_v59, %v1840_v12  ;;  %v1480_v63 = vpop.f32.mrb[19].mxu0  ;;  %v1371_v61 = vld [vmem:[%s2011_s9] ss:$0 sm:$0xff] }
0x1452   : > { %1607 = vtanh.f32 %v1037_v62  ;;  %v1366_v3 = vmul.f32 -1.442695, %v1037_v62 }
0x1454   : > { %1609 = vpow2.f32 %v1366_v3 }
0x145c   : > { %v1608_v0 = vpop.eup %1607 }
0x145d   : > { %1050 = vrot.lane.b32.xlu0 %v1608_v0, %s1684_s29 }
0x145e   : > { %v1610_v5 = vpop.eup %1609 }
0x145f   : > { %v1041_v6 = vadd.f32 1.0, %v1610_v5 }
0x1461   : > { %1611 = vrcp.f32 %v1041_v6 }
0x146b   : > { %v1612_v7 = vpop.eup %1611 }
0x146c   : > { %v1048_v11 = vmul.f32 %v1612_v7, %v1046_v10 }
0x14cf   : > { %v1051_v8 = vpop.permute.xlu0 %1050 }
0x14d0   : > { %v1053_v9 = vmul.f32 %v1612_v7, %v1051_v8 }
0x14d2   : > { %1055 = vrot.lane.b32.xlu1 %v1053_v9, %s1685_s30 }
0x1544   : > { %v1056_v13 = vpop.permute.xlu1 %1055 }
0x1545   : > { %v1058_v14 = vadd.f32 %v1056_v13, %v1048_v11 }
0x1547   : > { %1613 = vtanh.f32 %v1058_v14 }
0x1551   : > { %v1614_v12 = vpop.eup %1613 }
0x1552   : > { %1061 = vrot.lane.b32.xlu0 %v1614_v12, %s1684_s29 }
0x15c4   : > { %v1062_v15 = vpop.permute.xlu0 %1061 }
0x15c5   : > { %v1064_v16 = vmul.f32 %v1612_v7, %v1062_v15 }
0x15c7   : > { %v1078_v17 = vsel %vm1077_vm8, %v1076_v55, %v1064_v16 }
0x15c8   : > { %1080 = vrot.lane.b32.xlu1 %v1078_v17, %s1685_s30 }
0x163a   : > { %v1081_v2 = vpop.permute.xlu1 %1080 }
0x163b   : > { %v1083_v18 = vsel %vm380_vm1, %v1081_v2, 0.0 }
0x163c   : > { %1084 = vadd.xlane.f32.xlu0 %v1083_v18 }
0x1652   : > { %1119 = vrot.lane.b32.xlu0 %v1117_v25, %s1686_s18 }
0x16c9   : > { %v1085_v19 = vpop.xlane.xlu0 %1084 }
0x16ca   : > { %v1086_v20 = vrot.slane %v1085_v19, 4 }
0x16cc   : > { %v1087_v4 = vadd.f32 %v1086_v20, %v1085_v19 }
0x16cd   : > { %v1120_v46 = vpop.permute.xlu0 %1119 }
0x16ce   : > { %v1088_v21 = vrot.slane %v1087_v4, 2 }
0x16d0   : > { %v1089_v22 = vadd.f32 %v1088_v21, %v1087_v4 }
0x16d2   : > { %v1090_v23 = vrot.slane %v1089_v22, 1 }
0x16d4   : > { %v1091_v24 = vadd.f32 %v1090_v23, %v1089_v22 }
0x16d6   : > { %1495 = vpush %v1091_v24 }
0x1707   : > { %s1496_s20 = spop %1495 }
0x1708   : > { %v1093_v26 = vstv %s1496_s20 }
0x1709   : > { %v1095_v27 = vmul.f32 0.00390625, %v1093_v26 }
0x170b   : > { %v1096_v28 = vsub.f32 %v1078_v17, %v1095_v27 }
0x170d   : > { %v1097_v29 = vmul.f32 %v1096_v28, %v1096_v28 }
0x170f   : > { %1099 = vrot.lane.b32.xlu1 %v1097_v29, %s1685_s30 }
0x1781   : > { %v1100_v30 = vpop.permute.xlu1 %1099 }
0x1782   : > { %v1102_v31 = vsel %vm380_vm1, %v1100_v30, 0.0 }
0x1783   : > { %1103 = vadd.xlane.f32.xlu1 %v1102_v31 }
0x1794   : > { %1125 = vrot.lane.b32.xlu1 %v1123_v32, %s1686_s18  ;;  %s1960_s18 = scalar_lea.hbm %s2012_s10, %s1374_s27 }
0x1810   : > { %v1104_v35 = vpop.xlane.xlu1 %1103 }
0x1811   : > { %v1105_v36 = vrot.slane %v1104_v35, 4 }
0x1813   : > { %v1106_v37 = vadd.f32 %v1105_v36, %v1104_v35 }
0x1814   : > { %v1126_v48 = vpop.permute.xlu1 %1125 }
0x1815   : > { %v1107_v38 = vrot.slane %v1106_v37, 2 }
0x1817   : > { %v1108_v39 = vadd.f32 %v1107_v38, %v1106_v37 }
0x1819   : > { %v1109_v40 = vrot.slane %v1108_v39, 1 }
0x181b   : > { %v1110_v41 = vadd.f32 %v1109_v40, %v1108_v39 }
0x181d   : > { %1497 = vpush %v1110_v41 }
0x184e   : > { %s1498_s11 = spop %1497 }
0x184f   : > { %v1112_v42 = vstv %s1498_s11 }
0x1850   : > { %v1113_v43 = vmul.f32 0.00390625, %v1112_v42 }
0x1852   : > { %v1114_v44 = vadd.f32 1e-05, %v1113_v43 }
0x1854   : > { %1615 = vrsqrt.f32 %v1114_v44 }
0x185e   : > { %v1616_v1 = vpop.eup %1615 }
0x185f   : > { %v1116_v47 = vmul.f32 %v1616_v1, %v1096_v28 }
0x1861   : > { %v1122_v49 = vmul.f32 %v1120_v46, %v1116_v47 }
0x1863   : > { %v1128_v50 = vadd.f32 %v1126_v48, %v1122_v49 }
0x1865   : > { %v1129_v51 = vpack.c.bf16 %v1128_v50, %v1128_v50 }
0x1867   : > { %1142 = vrot.lane.b32.xlu0 %v1129_v51, %s1685_s30  ;;  %s348_s30 = sand.u32 1, %s1671_s14  }
0x1868   : > { %s349_s28 = scalar_lea.vmem [#allocation2], %s348_s30  ;;  %s1274_s20 = scalar_lea.sflag [#allocation3], %s348_s30 }
0x1869   : > { %s1286_s29 = sshll.u32 %s349_s28, 4  ;;  %s1962_s29 = int_to_ptr.vmem [resolvable:$true] %s1286_s29 }
0x186a   : > { %s1617_s21 = scalar_lea.vmem %s1962_s29, 16  ;;  %p1624_p0 = scmp.lt.s32.totalorder %s1962_s29, %s1622_s25 }
0x186b   : > { %p1618_p11 = scmp.ne.s32.totalorder %s1962_s29, %s1617_s21  ;;  %p1625_p1 = scmp.lt.s32.totalorder %s1623_s26, %s1617_s21 }
0x186d   : > { %p1619_p12 = pnand %p1618_p11, %p1781_p5  ;;  %p1626_p2 = por %p1625_p1, %p1624_p0 }
0x186f   : > { %p1620_p13 = pneg %p1619_p12 }
0x1871   : > { %p1627_p3 = pnand %p1626_p2, %p1620_p13 }
0x18d9   : > { %v1143_v52 = vpop.permute.xlu0 %1142 }
0x18da   : > { %1486 = vmatmul.mubr.msk.bf16.vlgmr.msra.gmra.mrb[16].mxu1 %vm380_vm1, %v1143_v52 }
0x19ad   : > { %v1193_v54 = vpop.f32.mrb[16].mxu1 }
0x19ae   : > { %v1194_v55 = vadd.f32 %v1367_v53, %v1193_v54  ;;  %v1487_v56 = vpop.f32.mrb[17].mxu1 }
0x19af   : > { %v1196_v57 = vpop.f32.mrb[18].mxu1 }
0x19b0   : > { %v1199_v58 = vmax.f32 %v1194_v55, 0.0  ;;  %v1488_v59 = vpop.f32.mrb[19].mxu1 }
0x19b2   : > { %v1200_v60 = vpack.c.bf16 %v1199_v58, %v1199_v58 }
0x19b4   : > { %1492 = vmatmul.mubr.msk.bf16.vlgmr.msra.gmra.mrb[20].mxu0 %vm1216_vm9, %v1200_v60 }
0x1a87   : > { %v1254_v62 = vpop.f32.mrb[20].mxu0 }
0x1a88   : > { %v1255_v63 = vadd.f32 %v1371_v61, %v1254_v62  ;;  %v1493_v0 = vpop.f32.mrb[21].mxu0 }
0x1a89   : > { %v1257_v3 = vpop.f32.mrb[22].mxu0 }
0x1a8a   : > { %v1260_v5 = vmax.f32 %v1255_v63, 0.0  ;;  %v1494_v6 = vpop.f32.mrb[23].mxu0 }
0x1a8c   : > { %v1262_v7 = vsel %vm1261_vm10, %v1260_v5, 0.0 }
0x1a8d   : > { %v1263_v8 = vrot.slane %v1262_v7, 4 }
0x1a8f   : > { %v1264_v9 = vadd.f32 %v1263_v8, %v1262_v7 }
0x1a91   : > { %v1265_v10 = vrot.slane %v1264_v9, 2 }
0x1a93   : > { %v1266_v11 = vadd.f32 %v1265_v10, %v1264_v9 }
0x1a95   : > { %v1267_v13 = vrot.slane %v1266_v11, 1 }
0x1a97   : > { %v1268_v14 = vadd.f32 %v1267_v13, %v1266_v11 }
0x1a99   : > { %v1270_v12 = vmul.f32 0.125, %v1268_v14 }
0x1a9b   : > { %1272 = vst.msk [vmem:[%s349_s28] sm:$0x1] %vm1271_vm11, %v1270_v12 }
0x1a9c   : > { %1630 = shalt.err (!%p1627_p3)
}
0x1a9d   : > { %s1631_s30 = scalar_lea.hbm %s1960_s18, 16  ;;  %s1635_s11 = scalar_lea.hbm %s2012_s10, 32 }
0x1a9e   : > { %p1632_p4 = scmp.ne.s32.totalorder %s1960_s18, %s1631_s30  ;;  %p1636_p9 = scmp.lt.u32.totalorder %s1960_s18, %s2012_s10 }
0x1a9f   : > { %p1637_p10 = scmp.lt.u32.totalorder %s1635_s11, %s1631_s30  ;;  %p1639_p12 = scmp.lt.u32.totalorder %s1631_s30, %s1960_s18 }
0x1aa0   : > { %p1633_p7 = pnand %p1632_p4, %p1781_p5 }
0x1aa1   : > { %p1638_p11 = por %p1637_p10, %p1636_p9 }
0x1aa2   : > { %p1634_p8 = pneg %p1633_p7 }
0x1aa3   : > { %p1640_p13 = por %p1639_p12, %p1638_p11 }
0x1aa5   : > { %p1641_p0 = pnand %p1640_p13, %p1634_p8 }
0x1aa7   : > { %1644 = shalt.err (!%p1641_p0)
}
0x1aa8   : > { %1499 = dma.vmem_to_hbm [thread:$0]  (%p1781_p5), %s1962_s29, 16, %s1960_s18, %s1274_s20  }
0x1aa9 PF: > { %p1505_p1 = scmp.ge.s32.totalorder %s1679_s16, 2  ;;  %s1298_s21 = sand.u32 1, %s1667_s13  }
0x1aaa   : > { %s1299_s25 = scalar_lea.sflag [#allocation3], %s1298_s21 }
0x1aab   : > { %p1502_p2 = pnand %p1505_p1, %p1785_p6 }
0x1aad   : > { %1662 = dma.done.wait (!%p1502_p2), %s1299_s25, 16  }
0x1aae   : > { %1664 = vsyncadd (!%p1502_p2), %s1299_s25, 4294967280  ;;  %p20_p3 = scmp.ge.s32.totalorder %s1768_s19, 4   ;;  %s2015_s13 = smov %s1671_s14 }
0x1aaf   : > { %s2016_s14 = smov %s1675_s15  ;;  %s2017_s15 = smov %s1779_s22 }
0x1ab0   : > { %s2018_s16 = smov %s1768_s19  ;;  %22 = sbr.rel (!%p20_p3) target bundleno = 3 (0x3), region = 95 }
0x1ab7   :  { %1303 = vsyncpa [#allocation3], 1 }
0x1ab8   :  { %1305 = vsyncpa [#allocation3 + $0x1], 1 }

// kernel: forward.2
= control target key start
LH: loop header
LB: loop body
LE: loop exit
PB: predicated region body
PF: predicated region fallthrough
CT: control target
= control target key end

     0   :  { %s1455_s24 = smov 0   ;;  %s1603_s0 = inlined_call_operand.vmem [shape: f32[2,8,32], index: 0, kind: input, shape index: {}]   ;;  %s1604_s1 = inlined_call_operand.vmem [shape: bf16[32,32], index: 1, kind: input, shape index: {}]   ;;  %s1605_s2 = inlined_call_operand.vmem [shape: f32[1,32], index: 2, kind: input, shape index: {}]   ;;  %s1606_s3 = inlined_call_operand.vmem [shape: bf16[32,32], index: 3, kind: input, shape index: {}]   ;;  %s1607_s4 = inlined_call_operand.vmem [shape: f32[1,32], index: 4, kind: input, shape index: {}]   ;;  %s1608_s5 = inlined_call_operand.vmem [shape: bf16[32,32], index: 5, kind: input, shape index: {}]   ;;  %s1609_s6 = inlined_call_operand.vmem [shape: f32[1,32], index: 6, kind: input, shape index: {}]   ;;  %s1610_s7 = inlined_call_operand.vmem [shape: bf16[32,32], index: 7, kind: input, shape index: {}]   ;;  %s1611_s8 = inlined_call_operand.vmem [shape: f32[1,32], index: 8, kind: input, shape index: {}]   ;;  %s1612_s9 = inlined_call_operand.vmem [shape: f32[1,32], index: 9, kind: input, shape index: {}]   ;;  %s1613_s10 = inlined_call_operand.vmem [shape: f32[1,32], index: 10, kind: input, shape index: {}]   ;;  %s1614_s11 = inlined_call_operand.vmem [shape: bf16[32,64], index: 11, kind: input, shape index: {}]   ;;  %s1615_s12 = inlined_call_operand.vmem [shape: f32[1,64], index: 12, kind: input, shape index: {}]   ;;  %s1616_s13 = inlined_call_operand.vmem [shape: bf16[64,32], index: 13, kind: input, shape index: {}]   ;;  %s1617_s14 = inlined_call_operand.vmem [shape: f32[1,32], index: 14, kind: input, shape index: {}]   ;;  %s1618_s15 = inlined_call_operand.vmem [shape: f32[1,32], index: 15, kind: input, shape index: {}]   ;;  %s1619_s16 = inlined_call_operand.vmem [shape: f32[1,32], index: 16, kind: input, shape index: {}]   ;;  %s1620_s17 = inlined_call_operand.vmem [shape: f32[2,8,32], index: 17, kind: output, shape index: {}]  }
   0x1   :  { %1622 = sst [smem:[#allocation2_spill]] %s1603_s0 }
   0x2   :  { %1623 = sst [smem:[#allocation3_spill]] %s1604_s1 }
   0x3 LB: > { %s1192_s25 = sadd.s32 4294967295, %s1361_s24   ;;  %p1196_p0 = scmp.ge.s32.totalorder %s1361_s24, 1  ;;  %s1361_s24 = sphi %s1455_s24, %s27_s24  }
   0x4   : > { %p486_p1 = scmp.lt.s32.totalorder %s1361_s24, 3 }
   0x6   : > { %p487_p2 = pnand %p1196_p0, %p486_p1 }
   0x7   : > { %v1331_v0 = vld [vmem:[%s1606_s3] sm:$0xff] (!%p487_p2)   ;;  %v1363_v1 = vmov (!%p487_p2), 0.0   ;;  %v1332_v2 = vld [vmem:[%s1606_s3 + $0x8] sm:$0xff] (!%p487_p2)   ;;  %s1624_s18 = sld [smem:[#allocation3_spill]] (!%p487_p2)  ;;  %vm1364_vm0 = vmmov (!%p487_p2), 0   ;;  %p536_p3 = scmp.lt.s32.totalorder (!%p487_p2), %s1192_s25, 1 }
   0x8   : > { %490 = sbr.rel (%p487_p2) target bundleno = 2291 (0x8f3), region = 88  ;;  %1265 = vmatprep.subr.bf16.mxu1 (!%p487_p2), %v1363_v1  ;;  %1257 = vmatprep.subr.bf16.mxu0 (!%p487_p2), %v1363_v1  ;;  %s1625_s23 = sld [smem:[#allocation2_spill]] (!%p487_p2)  ;;  %vm570_vm1 = vcmask (!%p487_p2), 261120   ;;  %v1203_v7 = vld [vmem:[%s1607_s4] ss:$0 sm:$0xff] (!%p487_p2)  ;;  %v1336_v23 = vld [vmem:[%s1608_s5 + $0x8] sm:$0xff] (!%p487_p2)  }
   0x9   : > { %1266 = vmatpush3.bf16.msra.mxu1 (!%p487_p2), %v1331_v0  ;;  %1269 = vmatprep.mubr.msk.bf16.mxu1 (!%p487_p2), %vm1364_vm0, %v1363_v1  ;;  %v1199_v14 = vld [vmem:[%s1605_s2] ss:$0 sm:$0xff] (!%p487_p2)  ;;  %vm789_vm2 = vcmask (!%p487_p2), 64512   ;;  %vm806_vm3 = vcmask (!%p487_p2), 1043456   ;;  %v1338_v48 = vld [vmem:[%s1610_s7 + $0x8] sm:$0xff] (!%p487_p2)   ;;  %vm1064_vm4 = vcmask (!%p487_p2), 523264  }
   0xa   : > { %1267 = vmatprep.subr.bf16.mxu1 (!%p487_p2), %v1363_v1  ;;  %1261 = vmatprep.mubr.msk.bf16.mxu0 (!%p487_p2), %vm1364_vm0, %v1363_v1  ;;  %v1335_v22 = vld [vmem:[%s1608_s5] sm:$0xff] (!%p487_p2)  }
   0xb   : > { %v1207_v38 = vld [vmem:[%s1609_s6] ss:$0 sm:$0xff] (!%p487_p2) }
   0xc   : > { %v1337_v43 = vld [vmem:[%s1610_s7] sm:$0xff] (!%p487_p2)  }
   0xd   : > { %v1333_v3 = vld [vmem:[%s1624_s18] sm:$0xff] (!%p487_p2)   ;;  %v1334_v4 = vld [vmem:[%s1624_s18 + $0x8] sm:$0xff] (!%p487_p2)   ;;  %1268 = vmatpush3.bf16.msra.mxu1 (!%p487_p2), %v1332_v2 }
   0xe   : > { %1258 = vmatpush3.bf16.msra.mxu0 (!%p487_p2), %v1333_v3  ;;  %1281 = vmatprep.subr.bf16.mxu1 (!%p487_p2), %v1363_v1  ;;  %v1213_v54 = vld [vmem:[%s1611_s8] ss:$0 sm:$0xff] (!%p487_p2) }
   0xf   : > { %s1627_s25 = smov (!%p536_p3, %s1192_s25), 1  ;;  %1259 = vmatprep.subr.bf16.mxu0 %v1363_v1 }
  0x10   : > { %s1197_s20 = sshll.u32 %s1627_s25, 3 }
  0x11   : > { %s539_s26 = scalar_lea.vmem %s1625_s23, %s1197_s20  ;;  %s543_s23 = scalar_lea.vmem %s1620_s17, %s1197_s20 }
  0x12   : > { %v1492_v5 = vld [vmem:[%s539_s26] sm:$0xff]  ;;  %1260 = vmatpush3.bf16.msra.mxu0 %v1334_v4 }
  0x13   : > { %v546_v6 = vpack.c.bf16 %v1492_v5, %v1492_v5  ;;  %1273 = vmatprep.subr.bf16.mxu0 %v1363_v1  ;;  %v1339_v4 = vld [vmem:[%s1614_s11] sm:$0xff]  }
  0x15   : > { %1270 = vmatmul.mubr.msk.bf16.vlgmr.msra.gmra.mrb[0].mxu1 %vm570_vm1, %v546_v6  ;;  %1262 = vmatmul.mubr.msk.bf16.vlgmr.msra.gmra.mrb[0].mxu0 %vm570_vm1, %v546_v6 }
  0x16   : > { %1283 = vmatprep.mubr.msk.bf16.mxu1 %vm1364_vm0, %v1363_v1  ;;  %1277 = vmatprep.mubr.msk.bf16.mxu0 %vm1364_vm0, %v1363_v1 }
  0x17   : > { %1274 = vmatpush3.bf16.msra.mxu0 %v1335_v22 }
  0x18   : > { %1275 = vmatprep.subr.bf16.mxu0 %v1363_v1 }
  0x1b   : > { %1276 = vmatpush3.bf16.msra.mxu0 %v1336_v23 }
  0x1c   : > { %1287 = vmatprep.subr.bf16.mxu0 %v1363_v1 }
  0x1e   : > { %1278 = vmatmul.mubr.msk.bf16.vlgmr.msra.gmra.mrb[4].mxu0 %vm570_vm1, %v546_v6 }
  0x1f   : > { %1289 = vmatprep.mubr.msk.bf16.mxu0 %vm1364_vm0, %v1363_v1 }
  0xe8   : > { %v671_v8 = vpop.f32.mrb[0].mxu1  ;;  %v608_v9 = vpop.f32.mrb[0].mxu0 }
  0xe9   : > { %v672_v10 = vadd.f32 %v1203_v7, %v671_v8  ;;  %v1271_v11 = vpop.f32.mrb[1].mxu1  ;;  %v1263_v12 = vpop.f32.mrb[1].mxu0  ;;  %v609_v20 = vadd.f32 %v1199_v14, %v608_v9 }
  0xea   : > { %v674_v13 = vpop.f32.mrb[2].mxu1  ;;  %v611_v15 = vpop.f32.mrb[2].mxu0  ;;  %v1218_v12 = vld [vmem:[%s1613_s10] ss:$0 sm:$0xff] }
  0xeb   : > { %v741_v16 = vpack.c.bf16 %v672_v10, %v672_v10  ;;  %v1272_v17 = vpop.f32.mrb[3].mxu1  ;;  %v1264_v18 = vpop.f32.mrb[3].mxu0  ;;  %v740_v21 = vpack.c.bf16 %v609_v20, %v609_v20  ;;  %v1217_v10 = vld [vmem:[%s1612_s9] ss:$0 sm:$0xff] }
  0xec   : > { %v1342_v17 = vld [vmem:[%s1616_s13 + $0x8] sm:$0xff]   ;;  %v1343_v18 = vld [vmem:[%s1616_s13 + $0x10] sm:$0xff]   ;;  %v1219_v20 = vld [vmem:[%s1615_s12] ss:$0 sm:$0xff] }
  0xed   : > { %v746_v19 = vsel %vm570_vm1, %v741_v16, 0  ;;  %v1341_v16 = vld [vmem:[%s1616_s13] sm:$0xff]  }
  0xee   : > { %1282 = vmatpush3.bf16.xpose.msra.mxu1 %v746_v19  ;;  %v1344_v19 = vld [vmem:[%s1616_s13 + $0x18] sm:$0xff]  }
  0xef   : > { %1293 = vmatprep.subr.bf16.mxu1 %v1363_v1 }
  0xf1   : > { %v734_v35 = vpop.f32.mrb[4].mxu0 }
  0xf2   : > { %v1279_v36 = vpop.f32.mrb[5].mxu0  ;;  %v735_v40 = vadd.f32 %v1207_v38, %v734_v35  ;;  %v1223_v35 = vld [vmem:[%s1617_s14] ss:$0 sm:$0xff] }
  0xf3   : > { %v737_v37 = vpop.f32.mrb[6].mxu0 }
  0xf4   : > { %v1280_v39 = vpop.f32.mrb[7].mxu0  ;;  %v802_v41 = vpack.c.bf16 %v735_v40, %v735_v40 }
  0xf5   : > { %1284 = vmatmul.mubr.msk.bf16.vlgmr.msra.gmra.mrb[4].mxu1 %vm570_vm1, %v740_v21 }
  0xf6   : > { %1297 = vmatprep.mubr.msk.bf16.mxu1 %vm1364_vm0, %v1363_v1  ;;  %v808_v42 = vsel %vm806_vm3, %v802_v41, 0  ;;  %1294 = vmatpush3.bf16.msra.mxu1 %v1337_v43 }
  0xf7   : > { %1288 = vmatpush3.bf16.msra.mxu0 %v808_v42  ;;  %1295 = vmatprep.subr.bf16.mxu1 %v1363_v1 }
  0xf8   : > { %1301 = vmatprep.subr.bf16.mxu0 %v1363_v1 }
  0xfa   : > { %1296 = vmatpush3.bf16.msra.mxu1 %v1338_v48 }
  0xfb   : > { %1309 = vmatprep.subr.bf16.mxu1 %v1363_v1 }
 0x1c8   : > { %v782_v24 = vpop.f32.mrb[4].mxu1 }
 0x1c9   : > { %v788_v25 = vmul.f32 0.17677669, %v782_v24  ;;  %v1285_v26 = vpop.f32.mrb[5].mxu1 }
 0x1ca   : > { %v785_v27 = vpop.f32.mrb[6].mxu1 }
 0x1cb   : > { %v1286_v28 = vpop.f32.mrb[7].mxu1  ;;  %v790_v29 = vsel %vm789_vm2, %v788_v25, -inf }
 0x1cc   : > { %791 = vmax.xlane.f32.xlu0 %v790_v29 }
 0x259   : > { %v792_v30 = vpop.xlane.xlu0 %791 }
 0x25a   : > { %v793_v31 = vsub.f32 %v788_v25, %v792_v30 }
 0x25c   : > { %v794_v32 = vmul.f32 1.442695, %v793_v31 }
 0x25e   : > { %1345 = vpow2.f32 %v794_v32 }
 0x268   : > { %v1346_v33 = vpop.eup %1345 }
 0x269   : > { %v796_v34 = vsel %vm789_vm2, %v1346_v33, 0.0 }
 0x26a   : > { %797 = vadd.xlane.f32.xlu0 %v796_v34 }
 0x2f7   : > { %v798_v44 = vpop.xlane.xlu0 %797 }
 0x2f8   : > { %1347 = vrcp.f32 %v798_v44 }
 0x302   : > { %v1348_v45 = vpop.eup %1347 }
 0x303   : > { %v800_v46 = vmul.f32 %v1348_v45, %v1346_v33 }
 0x305   : > { %v801_v47 = vpack.c.bf16 %v800_v46, %v800_v46 }
 0x307   : > { %1290 = vmatmul.mubr.msk.bf16.vlgmr.msra.gmra.mrb[8].mxu0 %vm789_vm2, %v801_v47 }
 0x308   : > { %1305 = vmatprep.mubr.msk.bf16.mxu0 %vm1364_vm0, %v1363_v1  ;;  %1302 = vmatpush3.bf16.msra.mxu0 %v1339_v4 }
 0x309   : > { %1303 = vmatprep.subr.bf16.mxu0 %v1363_v1 }
 0x3da   : > { %v844_v49 = vpop.f32.mrb[8].mxu0 }
 0x3db   : > { %v850_v50 = vpack.c.bf16 %v844_v49, %v844_v49  ;;  %v1291_v51 = vpop.f32.mrb[9].mxu0 }
 0x3dc   : > { %v847_v52 = vpop.f32.mrb[10].mxu0 }
 0x3dd   : > { %v1292_v53 = vpop.f32.mrb[11].mxu0  ;;  %1298 = vmatmul.mubr.msk.bf16.vlgmr.msra.gmra.mrb[8].mxu1 %vm570_vm1, %v850_v50  ;;  %v1229_v52 = vld [vmem:[%s1618_s15] ss:$0 sm:$0xff] }
 0x3de   : > { %1317 = vmatprep.mubr.msk.bf16.mxu1 %vm1364_vm0, %v1363_v1  ;;  %1310 = vmatpush3.bf16.msra.mxu1 %v1341_v16 }
 0x3df   : > { %1311 = vmatprep.subr.bf16.mxu1 %v1363_v1 }
 0x3e2   : > { %1312 = vmatpush3.bf16.msra.mxu1 %v1342_v17 }
 0x3e3   : > { %1313 = vmatprep.subr.bf16.mxu1 %v1363_v1 }
 0x3e6   : > { %1314 = vmatpush3.bf16.msra.mxu1 %v1343_v18 }
 0x3e7   : > { %1315 = vmatprep.subr.bf16.mxu1 %v1363_v1 }
 0x3ea   : > { %1316 = vmatpush3.bf16.msra.mxu1 %v1344_v19 }
 0x4b0   : > { %v911_v55 = vpop.f32.mrb[8].mxu1 }
 0x4b1   : > { %v912_v56 = vadd.f32 %v1213_v54, %v911_v55  ;;  %v1299_v57 = vpop.f32.mrb[9].mxu1  ;;  %v1230_v54 = vld [vmem:[%s1619_s16] ss:$0 sm:$0xff] }
 0x4b2   : > { %v914_v58 = vpop.f32.mrb[10].mxu1 }
 0x4b3   : > { %v1300_v59 = vpop.f32.mrb[11].mxu1  ;;  %v917_v60 = vadd.f32 %v912_v56, %v1492_v5  ;;  %v1340_v5 = vld [vmem:[%s1614_s11 + $0x8] sm:$0xff]  }
 0x4b4   : > { %1304 = vmatpush3.bf16.msra.mxu0 %v1340_v5 }
 0x4b5   : > { %v920_v61 = vsel %vm570_vm1, %v917_v60, 0.0 }
 0x4b6   : > { %921 = vadd.xlane.f32.xlu1 %v920_v61 }
 0x543   : > { %v922_v62 = vpop.xlane.xlu1 %921 }
 0x544   : > { %v924_v63 = vmul.f32 0.03125, %v922_v62 }
 0x546   : > { %v925_v0 = vsub.f32 %v917_v60, %v924_v63 }
 0x548   : > { %v926_v2 = vmul.f32 %v925_v0, %v925_v0 }
 0x54a   : > { %v927_v3 = vsel %vm570_vm1, %v926_v2, 0.0 }
 0x54b   : > { %928 = vadd.xlane.f32.xlu1 %v927_v3 }
 0x5d8   : > { %v929_v6 = vpop.xlane.xlu1 %928 }
 0x5d9   : > { %v930_v7 = vmul.f32 0.03125, %v929_v6 }
 0x5db   : > { %v931_v8 = vadd.f32 1e-05, %v930_v7 }
 0x5dd   : > { %1349 = vrsqrt.f32 %v931_v8 }
 0x5e7   : > { %v1350_v9 = vpop.eup %1349 }
 0x5e8   : > { %v933_v11 = vmul.f32 %v1350_v9, %v925_v0 }
 0x5ea   : > { %v940_v13 = vmul.f32 %v1217_v10, %v933_v11 }
 0x5ec   : > { %v947_v14 = vadd.f32 %v1218_v12, %v940_v13 }
 0x5ee   : > { %v948_v15 = vpack.c.bf16 %v947_v14, %v947_v14 }
 0x5f0   : > { %1306 = vmatmul.mubr.msk.bf16.vlgmr.msra.gmra.mrb[12].mxu0 %vm570_vm1, %v948_v15 }
 0x6c3   : > { %v1009_v21 = vpop.f32.mrb[12].mxu0 }
 0x6c4   : > { %v1010_v22 = vadd.f32 %v1219_v20, %v1009_v21  ;;  %v1307_v23 = vpop.f32.mrb[13].mxu0 }
 0x6c5   : > { %v1012_v24 = vpop.f32.mrb[14].mxu0 }
 0x6c6   : > { %v1016_v25 = vmul.f32 0.044715, %v1010_v22  ;;  %v1308_v26 = vpop.f32.mrb[15].mxu0  ;;  %v1015_v32 = vmul.f32 0.5, %v1010_v22 }
 0x6c8   : > { %v1017_v27 = vmul.f32 %v1016_v25, %v1010_v22 }
 0x6ca   : > { %v1018_v28 = vmul.f32 %v1017_v27, %v1010_v22 }
 0x6cc   : > { %v1019_v29 = vadd.f32 %v1018_v28, %v1010_v22 }
 0x6ce   : > { %v1020_v30 = vmul.f32 0.7978846, %v1019_v29 }
 0x6d0   : > { %1351 = vtanh.f32 %v1020_v30 }
 0x6da   : > { %v1352_v31 = vpop.eup %1351 }
 0x6db   : > { %v1022_v33 = vadd.f32 1.0, %v1352_v31 }
 0x6dd   : > { %v1023_v1 = vmul.f32 %v1022_v33, %v1015_v32 }
 0x6df   : > { %v1024_v34 = vpack.c.bf16 %v1023_v1, %v1023_v1 }
 0x6e1   : > { %1318 = vmatmul.mubr.msk.bf16.vlgmr.msra.gmra.mrb[12].mxu1 %vm1064_vm4, %v1024_v34 }
 0x7b4   : > { %v1102_v36 = vpop.f32.mrb[12].mxu1 }
 0x7b5   : > { %v1103_v37 = vadd.f32 %v1223_v35, %v1102_v36  ;;  %v1319_v38 = vpop.f32.mrb[13].mxu1 }
 0x7b6   : > { %v1105_v39 = vpop.f32.mrb[14].mxu1 }
 0x7b7   : > { %v1320_v40 = vpop.f32.mrb[15].mxu1  ;;  %v1108_v41 = vadd.f32 %v1103_v37, %v947_v14 }
 0x7b9   : > { %v1111_v42 = vsel %vm570_vm1, %v1108_v41, 0.0 }
 0x7ba   : > { %1112 = vadd.xlane.f32.xlu0 %v1111_v42 }
 0x847   : > { %v1113_v43 = vpop.xlane.xlu0 %1112 }
 0x848   : > { %v1114_v44 = vmul.f32 0.03125, %v1113_v43 }
 0x84a   : > { %v1115_v45 = vsub.f32 %v1108_v41, %v1114_v44 }
 0x84c   : > { %v1116_v46 = vmul.f32 %v1115_v45, %v1115_v45 }
 0x84e   : > { %v1117_v47 = vsel %vm570_vm1, %v1116_v46, 0.0 }
 0x84f   : > { %1118 = vadd.xlane.f32.xlu1 %v1117_v47 }
 0x8dc   : > { %v1119_v48 = vpop.xlane.xlu1 %1118 }
 0x8dd   : > { %v1120_v49 = vmul.f32 0.03125, %v1119_v48 }
 0x8df   : > { %v1121_v50 = vadd.f32 1e-05, %v1120_v49 }
 0x8e1   : > { %1353 = vrsqrt.f32 %v1121_v50 }
 0x8eb   : > { %v1354_v51 = vpop.eup %1353 }
 0x8ec   : > { %v1123_v53 = vmul.f32 %v1354_v51, %v1115_v45 }
 0x8ee   : > { %v1130_v55 = vmul.f32 %v1229_v52, %v1123_v53 }
 0x8f0   : > { %v1137_v56 = vadd.f32 %v1230_v54, %v1130_v55 }
 0x8f2   : > { %1138 = vst.msk [vmem:[%s543_s23] sm:$0xff] %vm570_vm1, %v1137_v56 }
 0x8f3 PF: > { %s27_s24 = sadd.s32 1, %s1361_s24  }
 0x8f4   : > { %p24_p4 = scmp.ge.s32.totalorder %s27_s24, 4  }
 0x8f6   :  { %26 = sbr.rel (!%p24_p4) target bundleno = 3 (0x3), region = 118 }

</bundles_post_ra>
